<compile_context>
chip_gen: v5e
topology: v5e:2x2
jax: 0.10.0
libtpu: 0.0.40
codegen_flags: <defaults>
</compile_context>

<pallas_src>
import functools

import jax
import jax.numpy as jnp
from jax import lax
from jax.experimental import pallas as pl
from jax.experimental.pallas import tpu as pltpu


def _y_on_kernel(x_ref, ws_ref, wc_ref, bc_ref, col_ref, out_ref, pad_ref,
                 *, W, PAD):
    """One image.

    x_ref   : (1, Cin, H*W)   image, spatial flattened onto lanes
    ws_ref  : (Cout, 9*Cin)   plain 3x3 weights; column (ky*3+kx)*Cin + ci
    wc_ref  : (Cout, 9*Cin)   dilated 3x3 weights; same column order
    bc_ref  : (Cout, 1)       bias of the dilated conv
    col_ref : (Cin, H*W)      int32 lane-index % W (precomputed in wrapper)
    out_ref : (1, Cout, H*W)
    pad_ref : (Cin, PAD + H*W + PAD) VMEM scratch: flat zero-padded image
    """
    Cin, HW = x_ref.shape[1], x_ref.shape[2]
    Cout = ws_ref.shape[0]

    # Refresh the padded flat image.  Only the border strips are (re)zeroed
    # (never the full buffer).  They are zeroed every step rather than once at
    # program_id == 0 so correctness holds when the "parallel" batch axis is
    # split across TensorCores (each core has its own scratch instance).
    zeros_strip = jnp.zeros((Cin, PAD), jnp.float32)
    pad_ref[:, 0:PAD] = zeros_strip
    pad_ref[:, PAD + HW:2 * PAD + HW] = zeros_strip
    pad_ref[:, PAD:PAD + HW] = x_ref[0]          # vreg-aligned interior write

    # Hoisted per-image constants (JAX does not CSE broadcasts; build once).
    col = col_ref[...]                                        # (Cin, HW) int32
    col_mask = {dx: (col >= -dx) & (col < W - dx) for dx in (-2, -1, 1, 2)}
    ws = ws_ref[...]                                          # stay in vregs
    wc = wc_ref[...]

    acc_s = jnp.zeros((Cout, HW), jnp.float32)                # plain conv
    acc_c = jnp.broadcast_to(bc_ref[...], (Cout, HW))         # bias folded in

    # Fused tap loop over both convolutions: one masked shifted slice per
    # (tap, dilation) shared across the Cin inner loop; the two accumulation
    # chains are independent so the scheduler interleaves them on the VALUs.
    for ky in range(3):
        for kx in range(3):
            t = ky * 3 + kx
            slices = []
            for dil in (1, 2):
                dy, dx = (ky - 1) * dil, (kx - 1) * dil
                if dil == 2 and dy == 0 and dx == 0:
                    slices.append(slices[0])      # center tap: reuse dil-1 slice
                    continue
                shift = dy * W + dx
                # Shifted view of the zero-padded flat image: row overflow
                # lands in the zero strips, column wrap-around is masked.
                sh = pad_ref[:, PAD + shift:PAD + shift + HW]  # (Cin, HW)
                if dx != 0:
                    sh = jnp.where(col_mask[dx], sh, 0.0)
                slices.append(sh)
            sh_s, sh_c = slices
            # Channel contraction on the VPU: Cin broadcast mul-adds
            # ((Cout,1) x (1,HW)) instead of a tiny CxC MXU dot.
            for ci in range(Cin):
                c0 = t * Cin + ci
                w_s = ws[:, c0:c0 + 1]                         # (Cout, 1)
                w_c = wc[:, c0:c0 + 1]
                acc_s = acc_s + w_s * sh_s[ci:ci + 1, :]
                acc_c = acc_c + w_c * sh_c[ci:ci + 1, :]

    out_ref[0] = jnp.maximum(acc_s, 0.0) - jnp.maximum(acc_c, 0.0)


def y_on_forward(x_nchw, ws, wc, bc):
    """y_on.forward.

    x_nchw : (N, Cin, H, W)
    ws     : (Cout, Cin, 3, 3)   y_s weights (plain conv, padding=1, bias=False)
             TODO(synk): the original `Conv2d(inchannel, outchannel, ...)` call
             passes `inchannel` in the pdc_func slot (constructor bug); we
             implement the intended plain ('cv' -> F.conv2d) 3x3 conv.
    wc     : (Cout, Cin, 3, 3)   y_c weights (dilation=2, padding=2, bias=True)
    bc     : (Cout,)             y_c bias
    returns (N, Cout, H, W)
    """
    x_nchw = x_nchw.astype(jnp.float32)
    N, Cin, H, W = x_nchw.shape
    Cout = ws.shape[0]
    HW = H * W
    PAD = -(-(2 * W + 2) // 128) * 128       # >= max tap shift, vreg-aligned

    # Free (contiguous) reshapes / tiny one-time weight repacking.
    x_flat = x_nchw.reshape(N, Cin, HW)
    w2col = lambda w: jnp.transpose(w.astype(jnp.float32),
                                    (0, 2, 3, 1)).reshape(Cout, 9 * Cin)
    ws_mat, wc_mat = w2col(ws), w2col(wc)
    bc_col = bc.astype(jnp.float32).reshape(Cout, 1)
    col_ids = jnp.tile(jnp.arange(HW, dtype=jnp.int32) % W, (Cin, 1))

    def full_spec(shape):
        return pl.BlockSpec(shape, lambda b, _n=len(shape): (0,) * _n)

    grid_spec = pltpu.PrefetchScalarGridSpec(
        num_scalar_prefetch=0,
        grid=(N,),
        in_specs=[pl.BlockSpec((1, Cin, HW), lambda b: (b, 0, 0)),
                  full_spec((Cout, 9 * Cin)),
                  full_spec((Cout, 9 * Cin)),
                  full_spec((Cout, 1)),
                  full_spec((Cin, HW))],
        out_specs=pl.BlockSpec((1, Cout, HW), lambda b: (b, 0, 0)),
        scratch_shapes=[pltpu.VMEM((Cin, 2 * PAD + HW), jnp.float32)])

    # Explicit VMEM budget: double-buffered in/out blocks + params + scratch,
    # with headroom; never below 32 MiB, never above v7x's 64 MiB.
    block_bytes = 4 * (2 * Cin * HW                      # input block x2 bufs
                       + 2 * Cout * HW                   # output block x2 bufs
                       + 2 * Cout * 9 * Cin + Cout       # weights + bias
                       + Cin * HW                        # column-id table
                       + Cin * (2 * PAD + HW))           # scratch
    vmem_limit = int(min(max(4 * block_bytes, 32 << 20), 64 << 20))

    cost = pl.CostEstimate(
        flops=2 * N * 2 * 9 * Cin * Cout * HW,           # 2 convs, 9 taps, MAC
        transcendentals=0,
        bytes_accessed=4 * (N * Cin * HW + N * Cout * HW
                            + 2 * Cout * 9 * Cin + Cout + Cin * HW))

    out_flat = pl.pallas_call(
        functools.partial(_y_on_kernel, W=W, PAD=PAD),
        out_shape=jax.ShapeDtypeStruct((N, Cout, HW), jnp.float32),
        grid_spec=grid_spec,
        compiler_params=pltpu.CompilerParams(
            dimension_semantics=("parallel",),   # images independent -> 2 TCs on v7x
            vmem_limit_bytes=vmem_limit),
        cost_estimate=cost,
    )(x_flat, ws_mat, wc_mat, bc_col, col_ids)

    return out_flat.reshape(N, Cout, H, W)               # free reshape to NCHW


def reference(x, ws, wc, bc):
    """Pure-JAX (XLA conv) reference of the PyTorch y_on.forward."""
    dn = ("NCHW", "OIHW", "NCHW")

    def conv(inp, k, pad, dil):
        return lax.conv_general_dilated(
            inp, k, window_strides=(1, 1), padding=((pad, pad), (pad, pad)),
            rhs_dilation=(dil, dil), dimension_numbers=dn,
            precision=lax.Precision.HIGHEST)

    y_c = jnp.maximum(conv(x, wc, 2, 2) + bc.reshape(1, -1, 1, 1), 0.0)
    y_s = jnp.maximum(conv(x, ws, 1, 1), 0.0)
    return y_s - y_c


if __name__ == "__main__":
    key = jax.random.PRNGKey(0)
    kx, k1, k2, k3 = jax.random.split(key, 4)
    N, C, H, W = 2, 4, 16, 16
    x = jax.random.normal(kx, (N, C, H, W), jnp.float32)
    ws = 0.3 * jax.random.normal(k1, (C, C, 3, 3), jnp.float32)  # y_s (bias=False)
    wc = 0.3 * jax.random.normal(k2, (C, C, 3, 3), jnp.float32)  # y_c weights
    bc = 0.1 * jax.random.normal(k3, (C,), jnp.float32)          # y_c bias

    out = y_on_forward(x, ws, wc, bc)
    out = jax.block_until_ready(out)

    want = reference(x, ws, wc, bc)
    assert out.shape == want.shape == (N, C, H, W)
    err = float(jnp.max(jnp.abs(out - want)))
    assert jnp.allclose(out, want, atol=1e-3, rtol=1e-3), err
    print("KERNEL_OK")
</pallas_src>

<mosaic_0001>
module attributes {stable_mosaic.version = 11 : i64} {
  func.func @_y_on_kernel(%arg0: i32, %arg1: memref<1x4x256xf32, #tpu.memory_space<vmem>>, %arg2: memref<4x36xf32, #tpu.memory_space<vmem>>, %arg3: memref<4x36xf32, #tpu.memory_space<vmem>>, %arg4: memref<4x1xf32, #tpu.memory_space<vmem>>, %arg5: memref<4x256xi32, #tpu.memory_space<vmem>>, %arg6: memref<1x4x256xf32, #tpu.memory_space<vmem>>, %arg7: memref<4x512xf32, #tpu.memory_space<vmem>>) attributes {dimension_semantics = [#tpu.dimension_semantics<parallel>], iteration_bounds = array<i64: 2>, scalar_prefetch = 0 : i64, scratch_operands = 1 : i64, tpu.core_type = #tpu.core_type<tc>, window_params = [{transform_indices = @transform_0, window_bounds = array<i64: 1, 4, 256>}, {pipeline_mode = #tpu.pipeline_mode<synchronous>, transform_indices = @transform_1, window_bounds = array<i64: 4, 36>}, {pipeline_mode = #tpu.pipeline_mode<synchronous>, transform_indices = @transform_2, window_bounds = array<i64: 4, 36>}, {pipeline_mode = #tpu.pipeline_mode<synchronous>, transform_indices = @transform_3, window_bounds = array<i64: 4, 1>}, {pipeline_mode = #tpu.pipeline_mode<synchronous>, transform_indices = @transform_4, window_bounds = array<i64: 4, 256>}, {transform_indices = @transform_5, window_bounds = array<i64: 1, 4, 256>}]} {
    %cst = arith.constant 0.000000e+00 : f32
    %0 = vector.broadcast %cst : f32 to vector<4x128xf32>
    %c0 = arith.constant 0 : index
    %c0_0 = arith.constant 0 : index
    %1 = vector.load %arg7[%c0, %c0_0] : memref<4x512xf32, #tpu.memory_space<vmem>>, vector<4x128xf32>
    tpu.vector_store %arg7[%c0, %c0_0], %0 {strides = array<i32>} : memref<4x512xf32, #tpu.memory_space<vmem>>, vector<4x128xf32>,
    %c0_1 = arith.constant 0 : index
    %c384 = arith.constant 384 : index
    %2 = vector.load %arg7[%c0_1, %c384] : memref<4x512xf32, #tpu.memory_space<vmem>>, vector<4x128xf32>
    tpu.vector_store %arg7[%c0_1, %c384], %0 {strides = array<i32>} : memref<4x512xf32, #tpu.memory_space<vmem>>, vector<4x128xf32>,
    %c0_2 = arith.constant 0 : index
    %c0_3 = arith.constant 0 : index
    %c0_4 = arith.constant 0 : index
    %3 = vector.load %arg1[%c0_2, %c0_3, %c0_4] : memref<1x4x256xf32, #tpu.memory_space<vmem>>, vector<1x4x256xf32>
    %4 = vector.shape_cast %3 : vector<1x4x256xf32> to vector<4x256xf32>
    %c0_5 = arith.constant 0 : index
    %c128 = arith.constant 128 : index
    %5 = vector.load %arg7[%c0_5, %c128] : memref<4x512xf32, #tpu.memory_space<vmem>>, vector<4x256xf32>
    tpu.vector_store %arg7[%c0_5, %c128], %4 {strides = array<i32>} : memref<4x512xf32, #tpu.memory_space<vmem>>, vector<4x256xf32>,
    %c0_6 = arith.constant 0 : index
    %c0_7 = arith.constant 0 : index
    %6 = vector.load %arg5[%c0_6, %c0_7] : memref<4x256xi32, #tpu.memory_space<vmem>>, vector<4x256xi32>
    %c2_i32 = arith.constant 2 : i32
    %7 = vector.broadcast %c2_i32 : i32 to vector<4x256xi32>
    %8 = arith.cmpi sge, %6, %7 : vector<4x256xi32>
    %c18_i32 = arith.constant 18 : i32
    %9 = vector.broadcast %c18_i32 : i32 to vector<4x256xi32>
    %10 = arith.cmpi slt, %6, %9 : vector<4x256xi32>
    %11 = arith.andi %8, %10 : vector<4x256xi1>
    %c1_i32 = arith.constant 1 : i32
    %12 = vector.broadcast %c1_i32 : i32 to vector<4x256xi32>
    %13 = arith.cmpi sge, %6, %12 : vector<4x256xi32>
    %c17_i32 = arith.constant 17 : i32
    %14 = vector.broadcast %c17_i32 : i32 to vector<4x256xi32>
    %15 = arith.cmpi slt, %6, %14 : vector<4x256xi32>
    %16 = arith.andi %13, %15 : vector<4x256xi1>
    %c-1_i32 = arith.constant -1 : i32
    %17 = vector.broadcast %c-1_i32 : i32 to vector<4x256xi32>
    %18 = arith.cmpi sge, %6, %17 : vector<4x256xi32>
    %c15_i32 = arith.constant 15 : i32
    %19 = vector.broadcast %c15_i32 : i32 to vector<4x256xi32>
    %20 = arith.cmpi slt, %6, %19 : vector<4x256xi32>
    %21 = arith.andi %18, %20 : vector<4x256xi1>
    %c-2_i32 = arith.constant -2 : i32
    %22 = vector.broadcast %c-2_i32 : i32 to vector<4x256xi32>
    %23 = arith.cmpi sge, %6, %22 : vector<4x256xi32>
    %c14_i32 = arith.constant 14 : i32
    %24 = vector.broadcast %c14_i32 : i32 to vector<4x256xi32>
    %25 = arith.cmpi slt, %6, %24 : vector<4x256xi32>
    %26 = arith.andi %23, %25 : vector<4x256xi1>
    %c0_8 = arith.constant 0 : index
    %c0_9 = arith.constant 0 : index
    %27 = vector.load %arg2[%c0_8, %c0_9] : memref<4x36xf32, #tpu.memory_space<vmem>>, vector<4x36xf32>
    %c0_10 = arith.constant 0 : index
    %c0_11 = arith.constant 0 : index
    %28 = vector.load %arg3[%c0_10, %c0_11] : memref<4x36xf32, #tpu.memory_space<vmem>>, vector<4x36xf32>
    %cst_12 = arith.constant 0.000000e+00 : f32
    %29 = vector.broadcast %cst_12 : f32 to vector<4x256xf32>
    %c0_13 = arith.constant 0 : index
    %c0_14 = arith.constant 0 : index
    %30 = vector.load %arg4[%c0_13, %c0_14] : memref<4x1xf32, #tpu.memory_space<vmem>>, vector<4x1xf32>
    %31 = vector.shape_cast %30 : vector<4x1xf32> to vector<4x1xf32>
    %32 = vector.broadcast %31 : vector<4x1xf32> to vector<4x256xf32>
    %c0_15 = arith.constant 0 : index
    %c111 = arith.constant 111 : index
    %33 = vector.load %arg7[%c0_15, %c111] : memref<4x512xf32, #tpu.memory_space<vmem>>, vector<4x256xf32>
    %cst_16 = arith.constant 0.000000e+00 : f32
    %34 = vector.broadcast %cst_16 : f32 to vector<4x256xf32>
    %35 = arith.select %16, %33, %34 : vector<4x256xi1>, vector<4x256xf32>
    %c0_17 = arith.constant 0 : index
    %c94 = arith.constant 94 : index
    %36 = vector.load %arg7[%c0_17, %c94] : memref<4x512xf32, #tpu.memory_space<vmem>>, vector<4x256xf32>
    %cst_18 = arith.constant 0.000000e+00 : f32
    %37 = vector.broadcast %cst_18 : f32 to vector<4x256xf32>
    %38 = arith.select %11, %36, %37 : vector<4x256xi1>, vector<4x256xf32>
    %39 = vector.extract_strided_slice %27 {offsets = [0, 0], sizes = [4, 1], strides = [1, 1]} : vector<4x36xf32> to vector<4x1xf32>
    %40 = vector.extract_strided_slice %28 {offsets = [0, 0], sizes = [4, 1], strides = [1, 1]} : vector<4x36xf32> to vector<4x1xf32>
    %41 = vector.extract_strided_slice %35 {offsets = [0, 0], sizes = [1, 256], strides = [1, 1]} : vector<4x256xf32> to vector<1x256xf32>
    %42 = vector.broadcast %39 : vector<4x1xf32> to vector<4x256xf32>
    %43 = vector.broadcast %41 : vector<1x256xf32> to vector<4x256xf32>
    %44 = arith.mulf %42, %43 : vector<4x256xf32>
    %45 = arith.addf %29, %44 : vector<4x256xf32>
    %46 = vector.extract_strided_slice %38 {offsets = [0, 0], sizes = [1, 256], strides = [1, 1]} : vector<4x256xf32> to vector<1x256xf32>
    %47 = vector.broadcast %40 : vector<4x1xf32> to vector<4x256xf32>
    %48 = vector.broadcast %46 : vector<1x256xf32> to vector<4x256xf32>
    %49 = arith.mulf %47, %48 : vector<4x256xf32>
    %50 = arith.addf %32, %49 : vector<4x256xf32>
    %51 = vector.extract_strided_slice %27 {offsets = [0, 1], sizes = [4, 1], strides = [1, 1]} : vector<4x36xf32> to vector<4x1xf32>
    %52 = vector.extract_strided_slice %28 {offsets = [0, 1], sizes = [4, 1], strides = [1, 1]} : vector<4x36xf32> to vector<4x1xf32>
    %53 = vector.extract_strided_slice %35 {offsets = [1, 0], sizes = [1, 256], strides = [1, 1]} : vector<4x256xf32> to vector<1x256xf32>
    %54 = vector.broadcast %51 : vector<4x1xf32> to vector<4x256xf32>
    %55 = vector.broadcast %53 : vector<1x256xf32> to vector<4x256xf32>
    %56 = arith.mulf %54, %55 : vector<4x256xf32>
    %57 = arith.addf %45, %56 : vector<4x256xf32>
    %58 = vector.extract_strided_slice %38 {offsets = [1, 0], sizes = [1, 256], strides = [1, 1]} : vector<4x256xf32> to vector<1x256xf32>
    %59 = vector.broadcast %52 : vector<4x1xf32> to vector<4x256xf32>
    %60 = vector.broadcast %58 : vector<1x256xf32> to vector<4x256xf32>
    %61 = arith.mulf %59, %60 : vector<4x256xf32>
    %62 = arith.addf %50, %61 : vector<4x256xf32>
    %63 = vector.extract_strided_slice %27 {offsets = [0, 2], sizes = [4, 1], strides = [1, 1]} : vector<4x36xf32> to vector<4x1xf32>
    %64 = vector.extract_strided_slice %28 {offsets = [0, 2], sizes = [4, 1], strides = [1, 1]} : vector<4x36xf32> to vector<4x1xf32>
    %65 = vector.extract_strided_slice %35 {offsets = [2, 0], sizes = [1, 256], strides = [1, 1]} : vector<4x256xf32> to vector<1x256xf32>
    %66 = vector.broadcast %63 : vector<4x1xf32> to vector<4x256xf32>
    %67 = vector.broadcast %65 : vector<1x256xf32> to vector<4x256xf32>
    %68 = arith.mulf %66, %67 : vector<4x256xf32>
    %69 = arith.addf %57, %68 : vector<4x256xf32>
    %70 = vector.extract_strided_slice %38 {offsets = [2, 0], sizes = [1, 256], strides = [1, 1]} : vector<4x256xf32> to vector<1x256xf32>
    %71 = vector.broadcast %64 : vector<4x1xf32> to vector<4x256xf32>
    %72 = vector.broadcast %70 : vector<1x256xf32> to vector<4x256xf32>
    %73 = arith.mulf %71, %72 : vector<4x256xf32>
    %74 = arith.addf %62, %73 : vector<4x256xf32>
    %75 = vector.extract_strided_slice %27 {offsets = [0, 3], sizes = [4, 1], strides = [1, 1]} : vector<4x36xf32> to vector<4x1xf32>
    %76 = vector.extract_strided_slice %28 {offsets = [0, 3], sizes = [4, 1], strides = [1, 1]} : vector<4x36xf32> to vector<4x1xf32>
    %77 = vector.extract_strided_slice %35 {offsets = [3, 0], sizes = [1, 256], strides = [1, 1]} : vector<4x256xf32> to vector<1x256xf32>
    %78 = vector.broadcast %75 : vector<4x1xf32> to vector<4x256xf32>
    %79 = vector.broadcast %77 : vector<1x256xf32> to vector<4x256xf32>
    %80 = arith.mulf %78, %79 : vector<4x256xf32>
    %81 = arith.addf %69, %80 : vector<4x256xf32>
    %82 = vector.extract_strided_slice %38 {offsets = [3, 0], sizes = [1, 256], strides = [1, 1]} : vector<4x256xf32> to vector<1x256xf32>
    %83 = vector.broadcast %76 : vector<4x1xf32> to vector<4x256xf32>
    %84 = vector.broadcast %82 : vector<1x256xf32> to vector<4x256xf32>
    %85 = arith.mulf %83, %84 : vector<4x256xf32>
    %86 = arith.addf %74, %85 : vector<4x256xf32>
    %c0_19 = arith.constant 0 : index
    %c112 = arith.constant 112 : index
    %87 = vector.load %arg7[%c0_19, %c112] : memref<4x512xf32, #tpu.memory_space<vmem>>, vector<4x256xf32>
    %c0_20 = arith.constant 0 : index
    %c96 = arith.constant 96 : index
    %88 = vector.load %arg7[%c0_20, %c96] : memref<4x512xf32, #tpu.memory_space<vmem>>, vector<4x256xf32>
    %89 = vector.extract_strided_slice %27 {offsets = [0, 4], sizes = [4, 1], strides = [1, 1]} : vector<4x36xf32> to vector<4x1xf32>
    %90 = vector.extract_strided_slice %28 {offsets = [0, 4], sizes = [4, 1], strides = [1, 1]} : vector<4x36xf32> to vector<4x1xf32>
    %91 = vector.extract_strided_slice %87 {offsets = [0, 0], sizes = [1, 256], strides = [1, 1]} : vector<4x256xf32> to vector<1x256xf32>
    %92 = vector.broadcast %89 : vector<4x1xf32> to vector<4x256xf32>
    %93 = vector.broadcast %91 : vector<1x256xf32> to vector<4x256xf32>
    %94 = arith.mulf %92, %93 : vector<4x256xf32>
    %95 = arith.addf %81, %94 : vector<4x256xf32>
    %96 = vector.extract_strided_slice %88 {offsets = [0, 0], sizes = [1, 256], strides = [1, 1]} : vector<4x256xf32> to vector<1x256xf32>
    %97 = vector.broadcast %90 : vector<4x1xf32> to vector<4x256xf32>
    %98 = vector.broadcast %96 : vector<1x256xf32> to vector<4x256xf32>
    %99 = arith.mulf %97, %98 : vector<4x256xf32>
    %100 = arith.addf %86, %99 : vector<4x256xf32>
    %101 = vector.extract_strided_slice %27 {offsets = [0, 5], sizes = [4, 1], strides = [1, 1]} : vector<4x36xf32> to vector<4x1xf32>
    %102 = vector.extract_strided_slice %28 {offsets = [0, 5], sizes = [4, 1], strides = [1, 1]} : vector<4x36xf32> to vector<4x1xf32>
    %103 = vector.extract_strided_slice %87 {offsets = [1, 0], sizes = [1, 256], strides = [1, 1]} : vector<4x256xf32> to vector<1x256xf32>
    %104 = vector.broadcast %101 : vector<4x1xf32> to vector<4x256xf32>
    %105 = vector.broadcast %103 : vector<1x256xf32> to vector<4x256xf32>
    %106 = arith.mulf %104, %105 : vector<4x256xf32>
    %107 = arith.addf %95, %106 : vector<4x256xf32>
    %108 = vector.extract_strided_slice %88 {offsets = [1, 0], sizes = [1, 256], strides = [1, 1]} : vector<4x256xf32> to vector<1x256xf32>
    %109 = vector.broadcast %102 : vector<4x1xf32> to vector<4x256xf32>
    %110 = vector.broadcast %108 : vector<1x256xf32> to vector<4x256xf32>
    %111 = arith.mulf %109, %110 : vector<4x256xf32>
    %112 = arith.addf %100, %111 : vector<4x256xf32>
    %113 = vector.extract_strided_slice %27 {offsets = [0, 6], sizes = [4, 1], strides = [1, 1]} : vector<4x36xf32> to vector<4x1xf32>
    %114 = vector.extract_strided_slice %28 {offsets = [0, 6], sizes = [4, 1], strides = [1, 1]} : vector<4x36xf32> to vector<4x1xf32>
    %115 = vector.extract_strided_slice %87 {offsets = [2, 0], sizes = [1, 256], strides = [1, 1]} : vector<4x256xf32> to vector<1x256xf32>
    %116 = vector.broadcast %113 : vector<4x1xf32> to vector<4x256xf32>
    %117 = vector.broadcast %115 : vector<1x256xf32> to vector<4x256xf32>
    %118 = arith.mulf %116, %117 : vector<4x256xf32>
    %119 = arith.addf %107, %118 : vector<4x256xf32>
    %120 = vector.extract_strided_slice %88 {offsets = [2, 0], sizes = [1, 256], strides = [1, 1]} : vector<4x256xf32> to vector<1x256xf32>
    %121 = vector.broadcast %114 : vector<4x1xf32> to vector<4x256xf32>
    %122 = vector.broadcast %120 : vector<1x256xf32> to vector<4x256xf32>
    %123 = arith.mulf %121, %122 : vector<4x256xf32>
    %124 = arith.addf %112, %123 : vector<4x256xf32>
    %125 = vector.extract_strided_slice %27 {offsets = [0, 7], sizes = [4, 1], strides = [1, 1]} : vector<4x36xf32> to vector<4x1xf32>
    %126 = vector.extract_strided_slice %28 {offsets = [0, 7], sizes = [4, 1], strides = [1, 1]} : vector<4x36xf32> to vector<4x1xf32>
    %127 = vector.extract_strided_slice %87 {offsets = [3, 0], sizes = [1, 256], strides = [1, 1]} : vector<4x256xf32> to vector<1x256xf32>
    %128 = vector.broadcast %125 : vector<4x1xf32> to vector<4x256xf32>
    %129 = vector.broadcast %127 : vector<1x256xf32> to vector<4x256xf32>
    %130 = arith.mulf %128, %129 : vector<4x256xf32>
    %131 = arith.addf %119, %130 : vector<4x256xf32>
    %132 = vector.extract_strided_slice %88 {offsets = [3, 0], sizes = [1, 256], strides = [1, 1]} : vector<4x256xf32> to vector<1x256xf32>
    %133 = vector.broadcast %126 : vector<4x1xf32> to vector<4x256xf32>
    %134 = vector.broadcast %132 : vector<1x256xf32> to vector<4x256xf32>
    %135 = arith.mulf %133, %134 : vector<4x256xf32>
    %136 = arith.addf %124, %135 : vector<4x256xf32>
    %c0_21 = arith.constant 0 : index
    %c113 = arith.constant 113 : index
    %137 = vector.load %arg7[%c0_21, %c113] : memref<4x512xf32, #tpu.memory_space<vmem>>, vector<4x256xf32>
    %cst_22 = arith.constant 0.000000e+00 : f32
    %138 = vector.broadcast %cst_22 : f32 to vector<4x256xf32>
    %139 = arith.select %21, %137, %138 : vector<4x256xi1>, vector<4x256xf32>
    %c0_23 = arith.constant 0 : index
    %c98 = arith.constant 98 : index
    %140 = vector.load %arg7[%c0_23, %c98] : memref<4x512xf32, #tpu.memory_space<vmem>>, vector<4x256xf32>
    %cst_24 = arith.constant 0.000000e+00 : f32
    %141 = vector.broadcast %cst_24 : f32 to vector<4x256xf32>
    %142 = arith.select %26, %140, %141 : vector<4x256xi1>, vector<4x256xf32>
    %143 = vector.extract_strided_slice %27 {offsets = [0, 8], sizes = [4, 1], strides = [1, 1]} : vector<4x36xf32> to vector<4x1xf32>
    %144 = vector.extract_strided_slice %28 {offsets = [0, 8], sizes = [4, 1], strides = [1, 1]} : vector<4x36xf32> to vector<4x1xf32>
    %145 = vector.extract_strided_slice %139 {offsets = [0, 0], sizes = [1, 256], strides = [1, 1]} : vector<4x256xf32> to vector<1x256xf32>
    %146 = vector.broadcast %143 : vector<4x1xf32> to vector<4x256xf32>
    %147 = vector.broadcast %145 : vector<1x256xf32> to vector<4x256xf32>
    %148 = arith.mulf %146, %147 : vector<4x256xf32>
    %149 = arith.addf %131, %148 : vector<4x256xf32>
    %150 = vector.extract_strided_slice %142 {offsets = [0, 0], sizes = [1, 256], strides = [1, 1]} : vector<4x256xf32> to vector<1x256xf32>
    %151 = vector.broadcast %144 : vector<4x1xf32> to vector<4x256xf32>
    %152 = vector.broadcast %150 : vector<1x256xf32> to vector<4x256xf32>
    %153 = arith.mulf %151, %152 : vector<4x256xf32>
    %154 = arith.addf %136, %153 : vector<4x256xf32>
    %155 = vector.extract_strided_slice %27 {offsets = [0, 9], sizes = [4, 1], strides = [1, 1]} : vector<4x36xf32> to vector<4x1xf32>
    %156 = vector.extract_strided_slice %28 {offsets = [0, 9], sizes = [4, 1], strides = [1, 1]} : vector<4x36xf32> to vector<4x1xf32>
    %157 = vector.extract_strided_slice %139 {offsets = [1, 0], sizes = [1, 256], strides = [1, 1]} : vector<4x256xf32> to vector<1x256xf32>
    %158 = vector.broadcast %155 : vector<4x1xf32> to vector<4x256xf32>
    %159 = vector.broadcast %157 : vector<1x256xf32> to vector<4x256xf32>
    %160 = arith.mulf %158, %159 : vector<4x256xf32>
    %161 = arith.addf %149, %160 : vector<4x256xf32>
    %162 = vector.extract_strided_slice %142 {offsets = [1, 0], sizes = [1, 256], strides = [1, 1]} : vector<4x256xf32> to vector<1x256xf32>
    %163 = vector.broadcast %156 : vector<4x1xf32> to vector<4x256xf32>
    %164 = vector.broadcast %162 : vector<1x256xf32> to vector<4x256xf32>
    %165 = arith.mulf %163, %164 : vector<4x256xf32>
    %166 = arith.addf %154, %165 : vector<4x256xf32>
    %167 = vector.extract_strided_slice %27 {offsets = [0, 10], sizes = [4, 1], strides = [1, 1]} : vector<4x36xf32> to vector<4x1xf32>
    %168 = vector.extract_strided_slice %28 {offsets = [0, 10], sizes = [4, 1], strides = [1, 1]} : vector<4x36xf32> to vector<4x1xf32>
    %169 = vector.extract_strided_slice %139 {offsets = [2, 0], sizes = [1, 256], strides = [1, 1]} : vector<4x256xf32> to vector<1x256xf32>
    %170 = vector.broadcast %167 : vector<4x1xf32> to vector<4x256xf32>
    %171 = vector.broadcast %169 : vector<1x256xf32> to vector<4x256xf32>
    %172 = arith.mulf %170, %171 : vector<4x256xf32>
    %173 = arith.addf %161, %172 : vector<4x256xf32>
    %174 = vector.extract_strided_slice %142 {offsets = [2, 0], sizes = [1, 256], strides = [1, 1]} : vector<4x256xf32> to vector<1x256xf32>
    %175 = vector.broadcast %168 : vector<4x1xf32> to vector<4x256xf32>
    %176 = vector.broadcast %174 : vector<1x256xf32> to vector<4x256xf32>
    %177 = arith.mulf %175, %176 : vector<4x256xf32>
    %178 = arith.addf %166, %177 : vector<4x256xf32>
    %179 = vector.extract_strided_slice %27 {offsets = [0, 11], sizes = [4, 1], strides = [1, 1]} : vector<4x36xf32> to vector<4x1xf32>
    %180 = vector.extract_strided_slice %28 {offsets = [0, 11], sizes = [4, 1], strides = [1, 1]} : vector<4x36xf32> to vector<4x1xf32>
    %181 = vector.extract_strided_slice %139 {offsets = [3, 0], sizes = [1, 256], strides = [1, 1]} : vector<4x256xf32> to vector<1x256xf32>
    %182 = vector.broadcast %179 : vector<4x1xf32> to vector<4x256xf32>
    %183 = vector.broadcast %181 : vector<1x256xf32> to vector<4x256xf32>
    %184 = arith.mulf %182, %183 : vector<4x256xf32>
    %185 = arith.addf %173, %184 : vector<4x256xf32>
    %186 = vector.extract_strided_slice %142 {offsets = [3, 0], sizes = [1, 256], strides = [1, 1]} : vector<4x256xf32> to vector<1x256xf32>
    %187 = vector.broadcast %180 : vector<4x1xf32> to vector<4x256xf32>
    %188 = vector.broadcast %186 : vector<1x256xf32> to vector<4x256xf32>
    %189 = arith.mulf %187, %188 : vector<4x256xf32>
    %190 = arith.addf %178, %189 : vector<4x256xf32>
    %c0_25 = arith.constant 0 : index
    %c127 = arith.constant 127 : index
    %191 = vector.load %arg7[%c0_25, %c127] : memref<4x512xf32, #tpu.memory_space<vmem>>, vector<4x256xf32>
    %cst_26 = arith.constant 0.000000e+00 : f32
    %192 = vector.broadcast %cst_26 : f32 to vector<4x256xf32>
    %193 = arith.select %16, %191, %192 : vector<4x256xi1>, vector<4x256xf32>
    %c0_27 = arith.constant 0 : index
    %c126 = arith.constant 126 : index
    %194 = vector.load %arg7[%c0_27, %c126] : memref<4x512xf32, #tpu.memory_space<vmem>>, vector<4x256xf32>
    %cst_28 = arith.constant 0.000000e+00 : f32
    %195 = vector.broadcast %cst_28 : f32 to vector<4x256xf32>
    %196 = arith.select %11, %194, %195 : vector<4x256xi1>, vector<4x256xf32>
    %197 = vector.extract_strided_slice %27 {offsets = [0, 12], sizes = [4, 1], strides = [1, 1]} : vector<4x36xf32> to vector<4x1xf32>
    %198 = vector.extract_strided_slice %28 {offsets = [0, 12], sizes = [4, 1], strides = [1, 1]} : vector<4x36xf32> to vector<4x1xf32>
    %199 = vector.extract_strided_slice %193 {offsets = [0, 0], sizes = [1, 256], strides = [1, 1]} : vector<4x256xf32> to vector<1x256xf32>
    %200 = vector.broadcast %197 : vector<4x1xf32> to vector<4x256xf32>
    %201 = vector.broadcast %199 : vector<1x256xf32> to vector<4x256xf32>
    %202 = arith.mulf %200, %201 : vector<4x256xf32>
    %203 = arith.addf %185, %202 : vector<4x256xf32>
    %204 = vector.extract_strided_slice %196 {offsets = [0, 0], sizes = [1, 256], strides = [1, 1]} : vector<4x256xf32> to vector<1x256xf32>
    %205 = vector.broadcast %198 : vector<4x1xf32> to vector<4x256xf32>
    %206 = vector.broadcast %204 : vector<1x256xf32> to vector<4x256xf32>
    %207 = arith.mulf %205, %206 : vector<4x256xf32>
    %208 = arith.addf %190, %207 : vector<4x256xf32>
    %209 = vector.extract_strided_slice %27 {offsets = [0, 13], sizes = [4, 1], strides = [1, 1]} : vector<4x36xf32> to vector<4x1xf32>
    %210 = vector.extract_strided_slice %28 {offsets = [0, 13], sizes = [4, 1], strides = [1, 1]} : vector<4x36xf32> to vector<4x1xf32>
    %211 = vector.extract_strided_slice %193 {offsets = [1, 0], sizes = [1, 256], strides = [1, 1]} : vector<4x256xf32> to vector<1x256xf32>
    %212 = vector.broadcast %209 : vector<4x1xf32> to vector<4x256xf32>
    %213 = vector.broadcast %211 : vector<1x256xf32> to vector<4x256xf32>
    %214 = arith.mulf %212, %213 : vector<4x256xf32>
    %215 = arith.addf %203, %214 : vector<4x256xf32>
    %216 = vector.extract_strided_slice %196 {offsets = [1, 0], sizes = [1, 256], strides = [1, 1]} : vector<4x256xf32> to vector<1x256xf32>
    %217 = vector.broadcast %210 : vector<4x1xf32> to vector<4x256xf32>
    %218 = vector.broadcast %216 : vector<1x256xf32> to vector<4x256xf32>
    %219 = arith.mulf %217, %218 : vector<4x256xf32>
    %220 = arith.addf %208, %219 : vector<4x256xf32>
    %221 = vector.extract_strided_slice %27 {offsets = [0, 14], sizes = [4, 1], strides = [1, 1]} : vector<4x36xf32> to vector<4x1xf32>
    %222 = vector.extract_strided_slice %28 {offsets = [0, 14], sizes = [4, 1], strides = [1, 1]} : vector<4x36xf32> to vector<4x1xf32>
    %223 = vector.extract_strided_slice %193 {offsets = [2, 0], sizes = [1, 256], strides = [1, 1]} : vector<4x256xf32> to vector<1x256xf32>
    %224 = vector.broadcast %221 : vector<4x1xf32> to vector<4x256xf32>
    %225 = vector.broadcast %223 : vector<1x256xf32> to vector<4x256xf32>
    %226 = arith.mulf %224, %225 : vector<4x256xf32>
    %227 = arith.addf %215, %226 : vector<4x256xf32>
    %228 = vector.extract_strided_slice %196 {offsets = [2, 0], sizes = [1, 256], strides = [1, 1]} : vector<4x256xf32> to vector<1x256xf32>
    %229 = vector.broadcast %222 : vector<4x1xf32> to vector<4x256xf32>
    %230 = vector.broadcast %228 : vector<1x256xf32> to vector<4x256xf32>
    %231 = arith.mulf %229, %230 : vector<4x256xf32>
    %232 = arith.addf %220, %231 : vector<4x256xf32>
    %233 = vector.extract_strided_slice %27 {offsets = [0, 15], sizes = [4, 1], strides = [1, 1]} : vector<4x36xf32> to vector<4x1xf32>
    %234 = vector.extract_strided_slice %28 {offsets = [0, 15], sizes = [4, 1], strides = [1, 1]} : vector<4x36xf32> to vector<4x1xf32>
    %235 = vector.extract_strided_slice %193 {offsets = [3, 0], sizes = [1, 256], strides = [1, 1]} : vector<4x256xf32> to vector<1x256xf32>
    %236 = vector.broadcast %233 : vector<4x1xf32> to vector<4x256xf32>
    %237 = vector.broadcast %235 : vector<1x256xf32> to vector<4x256xf32>
    %238 = arith.mulf %236, %237 : vector<4x256xf32>
    %239 = arith.addf %227, %238 : vector<4x256xf32>
    %240 = vector.extract_strided_slice %196 {offsets = [3, 0], sizes = [1, 256], strides = [1, 1]} : vector<4x256xf32> to vector<1x256xf32>
    %241 = vector.broadcast %234 : vector<4x1xf32> to vector<4x256xf32>
    %242 = vector.broadcast %240 : vector<1x256xf32> to vector<4x256xf32>
    %243 = arith.mulf %241, %242 : vector<4x256xf32>
    %244 = arith.addf %232, %243 : vector<4x256xf32>
    %c0_29 = arith.constant 0 : index
    %c128_30 = arith.constant 128 : index
    %245 = vector.load %arg7[%c0_29, %c128_30] : memref<4x512xf32, #tpu.memory_space<vmem>>, vector<4x256xf32>
    %246 = vector.extract_strided_slice %27 {offsets = [0, 16], sizes = [4, 1], strides = [1, 1]} : vector<4x36xf32> to vector<4x1xf32>
    %247 = vector.extract_strided_slice %28 {offsets = [0, 16], sizes = [4, 1], strides = [1, 1]} : vector<4x36xf32> to vector<4x1xf32>
    %248 = vector.extract_strided_slice %245 {offsets = [0, 0], sizes = [1, 256], strides = [1, 1]} : vector<4x256xf32> to vector<1x256xf32>
    %249 = vector.broadcast %246 : vector<4x1xf32> to vector<4x256xf32>
    %250 = vector.broadcast %248 : vector<1x256xf32> to vector<4x256xf32>
    %251 = arith.mulf %249, %250 : vector<4x256xf32>
    %252 = arith.addf %239, %251 : vector<4x256xf32>
    %253 = vector.extract_strided_slice %245 {offsets = [0, 0], sizes = [1, 256], strides = [1, 1]} : vector<4x256xf32> to vector<1x256xf32>
    %254 = vector.broadcast %247 : vector<4x1xf32> to vector<4x256xf32>
    %255 = vector.broadcast %253 : vector<1x256xf32> to vector<4x256xf32>
    %256 = arith.mulf %254, %255 : vector<4x256xf32>
    %257 = arith.addf %244, %256 : vector<4x256xf32>
    %258 = vector.extract_strided_slice %27 {offsets = [0, 17], sizes = [4, 1], strides = [1, 1]} : vector<4x36xf32> to vector<4x1xf32>
    %259 = vector.extract_strided_slice %28 {offsets = [0, 17], sizes = [4, 1], strides = [1, 1]} : vector<4x36xf32> to vector<4x1xf32>
    %260 = vector.extract_strided_slice %245 {offsets = [1, 0], sizes = [1, 256], strides = [1, 1]} : vector<4x256xf32> to vector<1x256xf32>
    %261 = vector.broadcast %258 : vector<4x1xf32> to vector<4x256xf32>
    %262 = vector.broadcast %260 : vector<1x256xf32> to vector<4x256xf32>
    %263 = arith.mulf %261, %262 : vector<4x256xf32>
    %264 = arith.addf %252, %263 : vector<4x256xf32>
    %265 = vector.extract_strided_slice %245 {offsets = [1, 0], sizes = [1, 256], strides = [1, 1]} : vector<4x256xf32> to vector<1x256xf32>
    %266 = vector.broadcast %259 : vector<4x1xf32> to vector<4x256xf32>
    %267 = vector.broadcast %265 : vector<1x256xf32> to vector<4x256xf32>
    %268 = arith.mulf %266, %267 : vector<4x256xf32>
    %269 = arith.addf %257, %268 : vector<4x256xf32>
    %270 = vector.extract_strided_slice %27 {offsets = [0, 18], sizes = [4, 1], strides = [1, 1]} : vector<4x36xf32> to vector<4x1xf32>
    %271 = vector.extract_strided_slice %28 {offsets = [0, 18], sizes = [4, 1], strides = [1, 1]} : vector<4x36xf32> to vector<4x1xf32>
    %272 = vector.extract_strided_slice %245 {offsets = [2, 0], sizes = [1, 256], strides = [1, 1]} : vector<4x256xf32> to vector<1x256xf32>
    %273 = vector.broadcast %270 : vector<4x1xf32> to vector<4x256xf32>
    %274 = vector.broadcast %272 : vector<1x256xf32> to vector<4x256xf32>
    %275 = arith.mulf %273, %274 : vector<4x256xf32>
    %276 = arith.addf %264, %275 : vector<4x256xf32>
    %277 = vector.extract_strided_slice %245 {offsets = [2, 0], sizes = [1, 256], strides = [1, 1]} : vector<4x256xf32> to vector<1x256xf32>
    %278 = vector.broadcast %271 : vector<4x1xf32> to vector<4x256xf32>
    %279 = vector.broadcast %277 : vector<1x256xf32> to vector<4x256xf32>
    %280 = arith.mulf %278, %279 : vector<4x256xf32>
    %281 = arith.addf %269, %280 : vector<4x256xf32>
    %282 = vector.extract_strided_slice %27 {offsets = [0, 19], sizes = [4, 1], strides = [1, 1]} : vector<4x36xf32> to vector<4x1xf32>
    %283 = vector.extract_strided_slice %28 {offsets = [0, 19], sizes = [4, 1], strides = [1, 1]} : vector<4x36xf32> to vector<4x1xf32>
    %284 = vector.extract_strided_slice %245 {offsets = [3, 0], sizes = [1, 256], strides = [1, 1]} : vector<4x256xf32> to vector<1x256xf32>
    %285 = vector.broadcast %282 : vector<4x1xf32> to vector<4x256xf32>
    %286 = vector.broadcast %284 : vector<1x256xf32> to vector<4x256xf32>
    %287 = arith.mulf %285, %286 : vector<4x256xf32>
    %288 = arith.addf %276, %287 : vector<4x256xf32>
    %289 = vector.extract_strided_slice %245 {offsets = [3, 0], sizes = [1, 256], strides = [1, 1]} : vector<4x256xf32> to vector<1x256xf32>
    %290 = vector.broadcast %283 : vector<4x1xf32> to vector<4x256xf32>
    %291 = vector.broadcast %289 : vector<1x256xf32> to vector<4x256xf32>
    %292 = arith.mulf %290, %291 : vector<4x256xf32>
    %293 = arith.addf %281, %292 : vector<4x256xf32>
    %c0_31 = arith.constant 0 : index
    %c129 = arith.constant 129 : index
    %294 = vector.load %arg7[%c0_31, %c129] : memref<4x512xf32, #tpu.memory_space<vmem>>, vector<4x256xf32>
    %cst_32 = arith.constant 0.000000e+00 : f32
    %295 = vector.broadcast %cst_32 : f32 to vector<4x256xf32>
    %296 = arith.select %21, %294, %295 : vector<4x256xi1>, vector<4x256xf32>
    %c0_33 = arith.constant 0 : index
    %c130 = arith.constant 130 : index
    %297 = vector.load %arg7[%c0_33, %c130] : memref<4x512xf32, #tpu.memory_space<vmem>>, vector<4x256xf32>
    %cst_34 = arith.constant 0.000000e+00 : f32
    %298 = vector.broadcast %cst_34 : f32 to vector<4x256xf32>
    %299 = arith.select %26, %297, %298 : vector<4x256xi1>, vector<4x256xf32>
    %300 = vector.extract_strided_slice %27 {offsets = [0, 20], sizes = [4, 1], strides = [1, 1]} : vector<4x36xf32> to vector<4x1xf32>
    %301 = vector.extract_strided_slice %28 {offsets = [0, 20], sizes = [4, 1], strides = [1, 1]} : vector<4x36xf32> to vector<4x1xf32>
    %302 = vector.extract_strided_slice %296 {offsets = [0, 0], sizes = [1, 256], strides = [1, 1]} : vector<4x256xf32> to vector<1x256xf32>
    %303 = vector.broadcast %300 : vector<4x1xf32> to vector<4x256xf32>
    %304 = vector.broadcast %302 : vector<1x256xf32> to vector<4x256xf32>
    %305 = arith.mulf %303, %304 : vector<4x256xf32>
    %306 = arith.addf %288, %305 : vector<4x256xf32>
    %307 = vector.extract_strided_slice %299 {offsets = [0, 0], sizes = [1, 256], strides = [1, 1]} : vector<4x256xf32> to vector<1x256xf32>
    %308 = vector.broadcast %301 : vector<4x1xf32> to vector<4x256xf32>
    %309 = vector.broadcast %307 : vector<1x256xf32> to vector<4x256xf32>
    %310 = arith.mulf %308, %309 : vector<4x256xf32>
    %311 = arith.addf %293, %310 : vector<4x256xf32>
    %312 = vector.extract_strided_slice %27 {offsets = [0, 21], sizes = [4, 1], strides = [1, 1]} : vector<4x36xf32> to vector<4x1xf32>
    %313 = vector.extract_strided_slice %28 {offsets = [0, 21], sizes = [4, 1], strides = [1, 1]} : vector<4x36xf32> to vector<4x1xf32>
    %314 = vector.extract_strided_slice %296 {offsets = [1, 0], sizes = [1, 256], strides = [1, 1]} : vector<4x256xf32> to vector<1x256xf32>
    %315 = vector.broadcast %312 : vector<4x1xf32> to vector<4x256xf32>
    %316 = vector.broadcast %314 : vector<1x256xf32> to vector<4x256xf32>
    %317 = arith.mulf %315, %316 : vector<4x256xf32>
    %318 = arith.addf %306, %317 : vector<4x256xf32>
    %319 = vector.extract_strided_slice %299 {offsets = [1, 0], sizes = [1, 256], strides = [1, 1]} : vector<4x256xf32> to vector<1x256xf32>
    %320 = vector.broadcast %313 : vector<4x1xf32> to vector<4x256xf32>
    %321 = vector.broadcast %319 : vector<1x256xf32> to vector<4x256xf32>
    %322 = arith.mulf %320, %321 : vector<4x256xf32>
    %323 = arith.addf %311, %322 : vector<4x256xf32>
    %324 = vector.extract_strided_slice %27 {offsets = [0, 22], sizes = [4, 1], strides = [1, 1]} : vector<4x36xf32> to vector<4x1xf32>
    %325 = vector.extract_strided_slice %28 {offsets = [0, 22], sizes = [4, 1], strides = [1, 1]} : vector<4x36xf32> to vector<4x1xf32>
    %326 = vector.extract_strided_slice %296 {offsets = [2, 0], sizes = [1, 256], strides = [1, 1]} : vector<4x256xf32> to vector<1x256xf32>
    %327 = vector.broadcast %324 : vector<4x1xf32> to vector<4x256xf32>
    %328 = vector.broadcast %326 : vector<1x256xf32> to vector<4x256xf32>
    %329 = arith.mulf %327, %328 : vector<4x256xf32>
    %330 = arith.addf %318, %329 : vector<4x256xf32>
    %331 = vector.extract_strided_slice %299 {offsets = [2, 0], sizes = [1, 256], strides = [1, 1]} : vector<4x256xf32> to vector<1x256xf32>
    %332 = vector.broadcast %325 : vector<4x1xf32> to vector<4x256xf32>
    %333 = vector.broadcast %331 : vector<1x256xf32> to vector<4x256xf32>
    %334 = arith.mulf %332, %333 : vector<4x256xf32>
    %335 = arith.addf %323, %334 : vector<4x256xf32>
    %336 = vector.extract_strided_slice %27 {offsets = [0, 23], sizes = [4, 1], strides = [1, 1]} : vector<4x36xf32> to vector<4x1xf32>
    %337 = vector.extract_strided_slice %28 {offsets = [0, 23], sizes = [4, 1], strides = [1, 1]} : vector<4x36xf32> to vector<4x1xf32>
    %338 = vector.extract_strided_slice %296 {offsets = [3, 0], sizes = [1, 256], strides = [1, 1]} : vector<4x256xf32> to vector<1x256xf32>
    %339 = vector.broadcast %336 : vector<4x1xf32> to vector<4x256xf32>
    %340 = vector.broadcast %338 : vector<1x256xf32> to vector<4x256xf32>
    %341 = arith.mulf %339, %340 : vector<4x256xf32>
    %342 = arith.addf %330, %341 : vector<4x256xf32>
    %343 = vector.extract_strided_slice %299 {offsets = [3, 0], sizes = [1, 256], strides = [1, 1]} : vector<4x256xf32> to vector<1x256xf32>
    %344 = vector.broadcast %337 : vector<4x1xf32> to vector<4x256xf32>
    %345 = vector.broadcast %343 : vector<1x256xf32> to vector<4x256xf32>
    %346 = arith.mulf %344, %345 : vector<4x256xf32>
    %347 = arith.addf %335, %346 : vector<4x256xf32>
    %c0_35 = arith.constant 0 : index
    %c143 = arith.constant 143 : index
    %348 = vector.load %arg7[%c0_35, %c143] : memref<4x512xf32, #tpu.memory_space<vmem>>, vector<4x256xf32>
    %cst_36 = arith.constant 0.000000e+00 : f32
    %349 = vector.broadcast %cst_36 : f32 to vector<4x256xf32>
    %350 = arith.select %16, %348, %349 : vector<4x256xi1>, vector<4x256xf32>
    %c0_37 = arith.constant 0 : index
    %c158 = arith.constant 158 : index
    %351 = vector.load %arg7[%c0_37, %c158] : memref<4x512xf32, #tpu.memory_space<vmem>>, vector<4x256xf32>
    %cst_38 = arith.constant 0.000000e+00 : f32
    %352 = vector.broadcast %cst_38 : f32 to vector<4x256xf32>
    %353 = arith.select %11, %351, %352 : vector<4x256xi1>, vector<4x256xf32>
    %354 = vector.extract_strided_slice %27 {offsets = [0, 24], sizes = [4, 1], strides = [1, 1]} : vector<4x36xf32> to vector<4x1xf32>
    %355 = vector.extract_strided_slice %28 {offsets = [0, 24], sizes = [4, 1], strides = [1, 1]} : vector<4x36xf32> to vector<4x1xf32>
    %356 = vector.extract_strided_slice %350 {offsets = [0, 0], sizes = [1, 256], strides = [1, 1]} : vector<4x256xf32> to vector<1x256xf32>
    %357 = vector.broadcast %354 : vector<4x1xf32> to vector<4x256xf32>
    %358 = vector.broadcast %356 : vector<1x256xf32> to vector<4x256xf32>
    %359 = arith.mulf %357, %358 : vector<4x256xf32>
    %360 = arith.addf %342, %359 : vector<4x256xf32>
    %361 = vector.extract_strided_slice %353 {offsets = [0, 0], sizes = [1, 256], strides = [1, 1]} : vector<4x256xf32> to vector<1x256xf32>
    %362 = vector.broadcast %355 : vector<4x1xf32> to vector<4x256xf32>
    %363 = vector.broadcast %361 : vector<1x256xf32> to vector<4x256xf32>
    %364 = arith.mulf %362, %363 : vector<4x256xf32>
    %365 = arith.addf %347, %364 : vector<4x256xf32>
    %366 = vector.extract_strided_slice %27 {offsets = [0, 25], sizes = [4, 1], strides = [1, 1]} : vector<4x36xf32> to vector<4x1xf32>
    %367 = vector.extract_strided_slice %28 {offsets = [0, 25], sizes = [4, 1], strides = [1, 1]} : vector<4x36xf32> to vector<4x1xf32>
    %368 = vector.extract_strided_slice %350 {offsets = [1, 0], sizes = [1, 256], strides = [1, 1]} : vector<4x256xf32> to vector<1x256xf32>
    %369 = vector.broadcast %366 : vector<4x1xf32> to vector<4x256xf32>
    %370 = vector.broadcast %368 : vector<1x256xf32> to vector<4x256xf32>
    %371 = arith.mulf %369, %370 : vector<4x256xf32>
    %372 = arith.addf %360, %371 : vector<4x256xf32>
    %373 = vector.extract_strided_slice %353 {offsets = [1, 0], sizes = [1, 256], strides = [1, 1]} : vector<4x256xf32> to vector<1x256xf32>
    %374 = vector.broadcast %367 : vector<4x1xf32> to vector<4x256xf32>
    %375 = vector.broadcast %373 : vector<1x256xf32> to vector<4x256xf32>
    %376 = arith.mulf %374, %375 : vector<4x256xf32>
    %377 = arith.addf %365, %376 : vector<4x256xf32>
    %378 = vector.extract_strided_slice %27 {offsets = [0, 26], sizes = [4, 1], strides = [1, 1]} : vector<4x36xf32> to vector<4x1xf32>
    %379 = vector.extract_strided_slice %28 {offsets = [0, 26], sizes = [4, 1], strides = [1, 1]} : vector<4x36xf32> to vector<4x1xf32>
    %380 = vector.extract_strided_slice %350 {offsets = [2, 0], sizes = [1, 256], strides = [1, 1]} : vector<4x256xf32> to vector<1x256xf32>
    %381 = vector.broadcast %378 : vector<4x1xf32> to vector<4x256xf32>
    %382 = vector.broadcast %380 : vector<1x256xf32> to vector<4x256xf32>
    %383 = arith.mulf %381, %382 : vector<4x256xf32>
    %384 = arith.addf %372, %383 : vector<4x256xf32>
    %385 = vector.extract_strided_slice %353 {offsets = [2, 0], sizes = [1, 256], strides = [1, 1]} : vector<4x256xf32> to vector<1x256xf32>
    %386 = vector.broadcast %379 : vector<4x1xf32> to vector<4x256xf32>
    %387 = vector.broadcast %385 : vector<1x256xf32> to vector<4x256xf32>
    %388 = arith.mulf %386, %387 : vector<4x256xf32>
    %389 = arith.addf %377, %388 : vector<4x256xf32>
    %390 = vector.extract_strided_slice %27 {offsets = [0, 27], sizes = [4, 1], strides = [1, 1]} : vector<4x36xf32> to vector<4x1xf32>
    %391 = vector.extract_strided_slice %28 {offsets = [0, 27], sizes = [4, 1], strides = [1, 1]} : vector<4x36xf32> to vector<4x1xf32>
    %392 = vector.extract_strided_slice %350 {offsets = [3, 0], sizes = [1, 256], strides = [1, 1]} : vector<4x256xf32> to vector<1x256xf32>
    %393 = vector.broadcast %390 : vector<4x1xf32> to vector<4x256xf32>
    %394 = vector.broadcast %392 : vector<1x256xf32> to vector<4x256xf32>
    %395 = arith.mulf %393, %394 : vector<4x256xf32>
    %396 = arith.addf %384, %395 : vector<4x256xf32>
    %397 = vector.extract_strided_slice %353 {offsets = [3, 0], sizes = [1, 256], strides = [1, 1]} : vector<4x256xf32> to vector<1x256xf32>
    %398 = vector.broadcast %391 : vector<4x1xf32> to vector<4x256xf32>
    %399 = vector.broadcast %397 : vector<1x256xf32> to vector<4x256xf32>
    %400 = arith.mulf %398, %399 : vector<4x256xf32>
    %401 = arith.addf %389, %400 : vector<4x256xf32>
    %c0_39 = arith.constant 0 : index
    %c144 = arith.constant 144 : index
    %402 = vector.load %arg7[%c0_39, %c144] : memref<4x512xf32, #tpu.memory_space<vmem>>, vector<4x256xf32>
    %c0_40 = arith.constant 0 : index
    %c160 = arith.constant 160 : index
    %403 = vector.load %arg7[%c0_40, %c160] : memref<4x512xf32, #tpu.memory_space<vmem>>, vector<4x256xf32>
    %404 = vector.extract_strided_slice %27 {offsets = [0, 28], sizes = [4, 1], strides = [1, 1]} : vector<4x36xf32> to vector<4x1xf32>
    %405 = vector.extract_strided_slice %28 {offsets = [0, 28], sizes = [4, 1], strides = [1, 1]} : vector<4x36xf32> to vector<4x1xf32>
    %406 = vector.extract_strided_slice %402 {offsets = [0, 0], sizes = [1, 256], strides = [1, 1]} : vector<4x256xf32> to vector<1x256xf32>
    %407 = vector.broadcast %404 : vector<4x1xf32> to vector<4x256xf32>
    %408 = vector.broadcast %406 : vector<1x256xf32> to vector<4x256xf32>
    %409 = arith.mulf %407, %408 : vector<4x256xf32>
    %410 = arith.addf %396, %409 : vector<4x256xf32>
    %411 = vector.extract_strided_slice %403 {offsets = [0, 0], sizes = [1, 256], strides = [1, 1]} : vector<4x256xf32> to vector<1x256xf32>
    %412 = vector.broadcast %405 : vector<4x1xf32> to vector<4x256xf32>
    %413 = vector.broadcast %411 : vector<1x256xf32> to vector<4x256xf32>
    %414 = arith.mulf %412, %413 : vector<4x256xf32>
    %415 = arith.addf %401, %414 : vector<4x256xf32>
    %416 = vector.extract_strided_slice %27 {offsets = [0, 29], sizes = [4, 1], strides = [1, 1]} : vector<4x36xf32> to vector<4x1xf32>
    %417 = vector.extract_strided_slice %28 {offsets = [0, 29], sizes = [4, 1], strides = [1, 1]} : vector<4x36xf32> to vector<4x1xf32>
    %418 = vector.extract_strided_slice %402 {offsets = [1, 0], sizes = [1, 256], strides = [1, 1]} : vector<4x256xf32> to vector<1x256xf32>
    %419 = vector.broadcast %416 : vector<4x1xf32> to vector<4x256xf32>
    %420 = vector.broadcast %418 : vector<1x256xf32> to vector<4x256xf32>
    %421 = arith.mulf %419, %420 : vector<4x256xf32>
    %422 = arith.addf %410, %421 : vector<4x256xf32>
    %423 = vector.extract_strided_slice %403 {offsets = [1, 0], sizes = [1, 256], strides = [1, 1]} : vector<4x256xf32> to vector<1x256xf32>
    %424 = vector.broadcast %417 : vector<4x1xf32> to vector<4x256xf32>
    %425 = vector.broadcast %423 : vector<1x256xf32> to vector<4x256xf32>
    %426 = arith.mulf %424, %425 : vector<4x256xf32>
    %427 = arith.addf %415, %426 : vector<4x256xf32>
    %428 = vector.extract_strided_slice %27 {offsets = [0, 30], sizes = [4, 1], strides = [1, 1]} : vector<4x36xf32> to vector<4x1xf32>
    %429 = vector.extract_strided_slice %28 {offsets = [0, 30], sizes = [4, 1], strides = [1, 1]} : vector<4x36xf32> to vector<4x1xf32>
    %430 = vector.extract_strided_slice %402 {offsets = [2, 0], sizes = [1, 256], strides = [1, 1]} : vector<4x256xf32> to vector<1x256xf32>
    %431 = vector.broadcast %428 : vector<4x1xf32> to vector<4x256xf32>
    %432 = vector.broadcast %430 : vector<1x256xf32> to vector<4x256xf32>
    %433 = arith.mulf %431, %432 : vector<4x256xf32>
    %434 = arith.addf %422, %433 : vector<4x256xf32>
    %435 = vector.extract_strided_slice %403 {offsets = [2, 0], sizes = [1, 256], strides = [1, 1]} : vector<4x256xf32> to vector<1x256xf32>
    %436 = vector.broadcast %429 : vector<4x1xf32> to vector<4x256xf32>
    %437 = vector.broadcast %435 : vector<1x256xf32> to vector<4x256xf32>
    %438 = arith.mulf %436, %437 : vector<4x256xf32>
    %439 = arith.addf %427, %438 : vector<4x256xf32>
    %440 = vector.extract_strided_slice %27 {offsets = [0, 31], sizes = [4, 1], strides = [1, 1]} : vector<4x36xf32> to vector<4x1xf32>
    %441 = vector.extract_strided_slice %28 {offsets = [0, 31], sizes = [4, 1], strides = [1, 1]} : vector<4x36xf32> to vector<4x1xf32>
    %442 = vector.extract_strided_slice %402 {offsets = [3, 0], sizes = [1, 256], strides = [1, 1]} : vector<4x256xf32> to vector<1x256xf32>
    %443 = vector.broadcast %440 : vector<4x1xf32> to vector<4x256xf32>
    %444 = vector.broadcast %442 : vector<1x256xf32> to vector<4x256xf32>
    %445 = arith.mulf %443, %444 : vector<4x256xf32>
    %446 = arith.addf %434, %445 : vector<4x256xf32>
    %447 = vector.extract_strided_slice %403 {offsets = [3, 0], sizes = [1, 256], strides = [1, 1]} : vector<4x256xf32> to vector<1x256xf32>
    %448 = vector.broadcast %441 : vector<4x1xf32> to vector<4x256xf32>
    %449 = vector.broadcast %447 : vector<1x256xf32> to vector<4x256xf32>
    %450 = arith.mulf %448, %449 : vector<4x256xf32>
    %451 = arith.addf %439, %450 : vector<4x256xf32>
    %c0_41 = arith.constant 0 : index
    %c145 = arith.constant 145 : index
    %452 = vector.load %arg7[%c0_41, %c145] : memref<4x512xf32, #tpu.memory_space<vmem>>, vector<4x256xf32>
    %cst_42 = arith.constant 0.000000e+00 : f32
    %453 = vector.broadcast %cst_42 : f32 to vector<4x256xf32>
    %454 = arith.select %21, %452, %453 : vector<4x256xi1>, vector<4x256xf32>
    %c0_43 = arith.constant 0 : index
    %c162 = arith.constant 162 : index
    %455 = vector.load %arg7[%c0_43, %c162] : memref<4x512xf32, #tpu.memory_space<vmem>>, vector<4x256xf32>
    %cst_44 = arith.constant 0.000000e+00 : f32
    %456 = vector.broadcast %cst_44 : f32 to vector<4x256xf32>
    %457 = arith.select %26, %455, %456 : vector<4x256xi1>, vector<4x256xf32>
    %458 = vector.extract_strided_slice %27 {offsets = [0, 32], sizes = [4, 1], strides = [1, 1]} : vector<4x36xf32> to vector<4x1xf32>
    %459 = vector.extract_strided_slice %28 {offsets = [0, 32], sizes = [4, 1], strides = [1, 1]} : vector<4x36xf32> to vector<4x1xf32>
    %460 = vector.extract_strided_slice %454 {offsets = [0, 0], sizes = [1, 256], strides = [1, 1]} : vector<4x256xf32> to vector<1x256xf32>
    %461 = vector.broadcast %458 : vector<4x1xf32> to vector<4x256xf32>
    %462 = vector.broadcast %460 : vector<1x256xf32> to vector<4x256xf32>
    %463 = arith.mulf %461, %462 : vector<4x256xf32>
    %464 = arith.addf %446, %463 : vector<4x256xf32>
    %465 = vector.extract_strided_slice %457 {offsets = [0, 0], sizes = [1, 256], strides = [1, 1]} : vector<4x256xf32> to vector<1x256xf32>
    %466 = vector.broadcast %459 : vector<4x1xf32> to vector<4x256xf32>
    %467 = vector.broadcast %465 : vector<1x256xf32> to vector<4x256xf32>
    %468 = arith.mulf %466, %467 : vector<4x256xf32>
    %469 = arith.addf %451, %468 : vector<4x256xf32>
    %470 = vector.extract_strided_slice %27 {offsets = [0, 33], sizes = [4, 1], strides = [1, 1]} : vector<4x36xf32> to vector<4x1xf32>
    %471 = vector.extract_strided_slice %28 {offsets = [0, 33], sizes = [4, 1], strides = [1, 1]} : vector<4x36xf32> to vector<4x1xf32>
    %472 = vector.extract_strided_slice %454 {offsets = [1, 0], sizes = [1, 256], strides = [1, 1]} : vector<4x256xf32> to vector<1x256xf32>
    %473 = vector.broadcast %470 : vector<4x1xf32> to vector<4x256xf32>
    %474 = vector.broadcast %472 : vector<1x256xf32> to vector<4x256xf32>
    %475 = arith.mulf %473, %474 : vector<4x256xf32>
    %476 = arith.addf %464, %475 : vector<4x256xf32>
    %477 = vector.extract_strided_slice %457 {offsets = [1, 0], sizes = [1, 256], strides = [1, 1]} : vector<4x256xf32> to vector<1x256xf32>
    %478 = vector.broadcast %471 : vector<4x1xf32> to vector<4x256xf32>
    %479 = vector.broadcast %477 : vector<1x256xf32> to vector<4x256xf32>
    %480 = arith.mulf %478, %479 : vector<4x256xf32>
    %481 = arith.addf %469, %480 : vector<4x256xf32>
    %482 = vector.extract_strided_slice %27 {offsets = [0, 34], sizes = [4, 1], strides = [1, 1]} : vector<4x36xf32> to vector<4x1xf32>
    %483 = vector.extract_strided_slice %28 {offsets = [0, 34], sizes = [4, 1], strides = [1, 1]} : vector<4x36xf32> to vector<4x1xf32>
    %484 = vector.extract_strided_slice %454 {offsets = [2, 0], sizes = [1, 256], strides = [1, 1]} : vector<4x256xf32> to vector<1x256xf32>
    %485 = vector.broadcast %482 : vector<4x1xf32> to vector<4x256xf32>
    %486 = vector.broadcast %484 : vector<1x256xf32> to vector<4x256xf32>
    %487 = arith.mulf %485, %486 : vector<4x256xf32>
    %488 = arith.addf %476, %487 : vector<4x256xf32>
    %489 = vector.extract_strided_slice %457 {offsets = [2, 0], sizes = [1, 256], strides = [1, 1]} : vector<4x256xf32> to vector<1x256xf32>
    %490 = vector.broadcast %483 : vector<4x1xf32> to vector<4x256xf32>
    %491 = vector.broadcast %489 : vector<1x256xf32> to vector<4x256xf32>
    %492 = arith.mulf %490, %491 : vector<4x256xf32>
    %493 = arith.addf %481, %492 : vector<4x256xf32>
    %494 = vector.extract_strided_slice %27 {offsets = [0, 35], sizes = [4, 1], strides = [1, 1]} : vector<4x36xf32> to vector<4x1xf32>
    %495 = vector.extract_strided_slice %28 {offsets = [0, 35], sizes = [4, 1], strides = [1, 1]} : vector<4x36xf32> to vector<4x1xf32>
    %496 = vector.extract_strided_slice %454 {offsets = [3, 0], sizes = [1, 256], strides = [1, 1]} : vector<4x256xf32> to vector<1x256xf32>
    %497 = vector.broadcast %494 : vector<4x1xf32> to vector<4x256xf32>
    %498 = vector.broadcast %496 : vector<1x256xf32> to vector<4x256xf32>
    %499 = arith.mulf %497, %498 : vector<4x256xf32>
    %500 = arith.addf %488, %499 : vector<4x256xf32>
    %501 = vector.extract_strided_slice %457 {offsets = [3, 0], sizes = [1, 256], strides = [1, 1]} : vector<4x256xf32> to vector<1x256xf32>
    %502 = vector.broadcast %495 : vector<4x1xf32> to vector<4x256xf32>
    %503 = vector.broadcast %501 : vector<1x256xf32> to vector<4x256xf32>
    %504 = arith.mulf %502, %503 : vector<4x256xf32>
    %505 = arith.addf %493, %504 : vector<4x256xf32>
    %cst_45 = arith.constant 0.000000e+00 : f32
    %506 = vector.broadcast %cst_45 : f32 to vector<4x256xf32>
    %507 = arith.maximumf %500, %506 : vector<4x256xf32>
    %cst_46 = arith.constant 0.000000e+00 : f32
    %508 = vector.broadcast %cst_46 : f32 to vector<4x256xf32>
    %509 = arith.maximumf %505, %508 : vector<4x256xf32>
    %510 = arith.subf %507, %509 : vector<4x256xf32>
    %c0_47 = arith.constant 0 : index
    %c0_48 = arith.constant 0 : index
    %c0_49 = arith.constant 0 : index
    %511 = vector.load %arg6[%c0_47, %c0_48, %c0_49] : memref<1x4x256xf32, #tpu.memory_space<vmem>>, vector<1x4x256xf32>
    %512 = vector.shape_cast %511 : vector<1x4x256xf32> to vector<4x256xf32>
    %513 = vector.shape_cast %510 : vector<4x256xf32> to vector<1x4x256xf32>
    tpu.vector_store %arg6[%c0_47, %c0_48, %c0_49], %513 {strides = array<i32>} : memref<1x4x256xf32, #tpu.memory_space<vmem>>, vector<1x4x256xf32>,
    return
  }
  func.func @transform_0(%arg0: i32) -> (i32, i32, i32) {
    %c0_i32 = arith.constant 0 : i32
    %c0_i32_0 = arith.constant 0 : i32
    %c0_i32_1 = arith.constant 0 : i32
    return %arg0, %c0_i32, %c0_i32_0 : i32, i32, i32
  }
  func.func @transform_1(%arg0: i32) -> (i32, i32) {
    %c0_i32 = arith.constant 0 : i32
    %c0_i32_0 = arith.constant 0 : i32
    %c0_i32_1 = arith.constant 0 : i32
    return %c0_i32, %c0_i32_0 : i32, i32
  }
  func.func @transform_2(%arg0: i32) -> (i32, i32) {
    %c0_i32 = arith.constant 0 : i32
    %c0_i32_0 = arith.constant 0 : i32
    %c0_i32_1 = arith.constant 0 : i32
    return %c0_i32, %c0_i32_0 : i32, i32
  }
  func.func @transform_3(%arg0: i32) -> (i32, i32) {
    %c0_i32 = arith.constant 0 : i32
    %c0_i32_0 = arith.constant 0 : i32
    %c0_i32_1 = arith.constant 0 : i32
    return %c0_i32, %c0_i32_0 : i32, i32
  }
  func.func @transform_4(%arg0: i32) -> (i32, i32) {
    %c0_i32 = arith.constant 0 : i32
    %c0_i32_0 = arith.constant 0 : i32
    %c0_i32_1 = arith.constant 0 : i32
    return %c0_i32, %c0_i32_0 : i32, i32
  }
  func.func @transform_5(%arg0: i32) -> (i32, i32, i32) {
    %c0_i32 = arith.constant 0 : i32
    %c0_i32_0 = arith.constant 0 : i32
    %c0_i32_1 = arith.constant 0 : i32
    return %arg0, %c0_i32, %c0_i32_0 : i32, i32, i32
  }
}

</mosaic_0001>

<bundles_post_ra>
// kernel: tpu_custom_call.1
= control target key start
LH: loop header
LB: loop body
LE: loop exit
PB: predicated region body
PF: predicated region fallthrough
CT: control target
= control target key end

     0   :  { %10 = vsyncpa [#allocation4], 0  ;;  %s2910_s0 = inlined_call_operand.hbm [shape: f32[2,4,256], index: 0, kind: input, shape index: {}]   ;;  %s2911_s1 = inlined_call_operand.hbm [shape: f32[4,36], index: 1, kind: input, shape index: {}]   ;;  %s2912_s2 = inlined_call_operand.hbm [shape: f32[4,36], index: 2, kind: input, shape index: {}]   ;;  %s2913_s3 = inlined_call_operand.vmem [shape: f32[4,1], index: 3, kind: input, shape index: {}]   ;;  %s2914_s4 = inlined_call_operand.vmem [shape: s32[4,256], index: 4, kind: input, shape index: {}]   ;;  %s2915_s5 = inlined_call_operand.hbm [shape: f32[2,4,256], index: 5, kind: output, shape index: {}]  }
   0x1   :  { %12 = vsyncpa [#allocation4 + $0x1], 0 }
   0x2   :  { %13 = vsyncpa [#allocation7], 0 }
   0x3   :  { %14 = vsyncpa [#allocation5], 0 }
   0x4   :  { %16 = vsyncpa [#allocation5 + $0x1], 0  ;;  %s2223_s18 = smov 0   ;;  %s2225_s19 = smov 0  }
   0x5   :  { %s2227_s20 = smov 0   ;;  %s2229_s21 = smov 0  }
   0x6 LB: > { %s2244_s22 = sadd.s32 4294967295, %s2136_s21   ;;  %s1760_s23 = sadd.s32 4294967294, %s2136_s21   ;;  %s2136_s21 = sphi %s2229_s21, %s2933_s21   ;;  %s2132_s20 = sphi %s2227_s20, %s2932_s20   ;;  %s2128_s19 = sphi %s2225_s19, %s2931_s19   ;;  %s2124_s18 = sphi %s2223_s18, %s2930_s18  }
   0x7   : > { %p42_p0 = scmp.ne.s32.totalorder %s2128_s19, %s2124_s18  ;;  %p43_p1 = scmp.eq.s32.totalorder %s2244_s22, 0 }
   0x8   : > { %p150_p2 = scmp.eq.s32.totalorder %s2244_s22, 1  ;;  %p156_p3 = scmp.eq.s32.totalorder %s1760_s23, 1 }
   0x9   : > { %p2253_p4 = por %p43_p1, %p42_p0  ;;  %p1761_p5 = scmp.ge.s32.totalorder %s2136_s21, 1 }
   0xa   : > { %p2258_p6 = por %p156_p3, %p42_p0  ;;  %p163_p7 = scmp.lt.s32.totalorder %s2136_s21, 3 }
   0xb   : > { %s175_s28 = sshll.u32 %s2911_s1, 4  ;;  %s2138_s30 = smov [#allocation6]   ;;  %s176_s28 = int_to_ptr.hbm [resolvable:$true] %s175_s28 }
   0xc   : > { %p2266_p8 = pnand %p1761_p5, %p163_p7  ;;  %s177_s6 = sshll.u32 %s2138_s30, 4  ;;  %s178_s6 = int_to_ptr.vmem [resolvable:$true] %s177_s6 }
   0xd   : > { %s187_s9 = sshll.u32 %s2912_s2, 4  ;;  %s2139_s10 = smov [#allocation8]   ;;  %s188_s9 = int_to_ptr.hbm [resolvable:$true] %s187_s9 }
   0xe   : > { %p1792_p10 = pneg %p2266_p8  ;;  %s189_s11 = sshll.u32 %s2139_s10, 4  ;;  %s190_s11 = int_to_ptr.vmem [resolvable:$true] %s189_s11 }
   0xf   : > { %s2279_s12 = sadd.s32 1, %s2136_s21   ;;  %s29_s13 = sadd.s32 1, %s2132_s20 }
  0x10   : > { %p1793_p11 = pnand %p1792_p10, %p43_p1  ;;  %s26_s14 = ssub.s32 %s2136_s21, %s2279_s12 }
  0x11   : > { %p36_p12 = scmp.ne.s32.totalorder %s2132_s20, %s2128_s19  ;;  %p27_p13 = scmp.eq.s32.totalorder %s26_s14, 0 }
  0x12   : > { %1795 = dma.hbm_to_vmem [thread:$0]  (!%p1793_p11), %s176_s28, 64, %s178_s6, [#allocation7]  }
  0x13   : > { %1798 = dma.hbm_to_vmem [thread:$0]  (!%p1793_p11), %s188_s9, 64, %s190_s11, [#allocation7]  }
  0x14   : > { %p37_p0 = scmp.eq.s32.totalorder %s2136_s21, 0  ;;  %p2289_p3 = por %p150_p2, %p36_p12 }
  0x15   : > { %p1809_p5 = scmp.lt.s32.totalorder %s2136_s21, 2  ;;  %s206_s17 = sand.u32 1, %s2132_s20  }
  0x16   : > { %s2295_s16 = scalar_select %p27_p13, %s2132_s20, %s29_s13  }
  0x17   : > { %p38_p7 = por %p37_p0, %p36_p12  ;;  %s1765_s23 = sshll.u32 %s206_s17, 3 }
  0x18   : > { %s1778_s26 = sshll.u32 %s2136_s21, 3  ;;  %s210_s6 = scalar_lea.vmem [#allocation3], %s1765_s23 }
  0x19   : > { %s215_s30 = scalar_lea.hbm %s2910_s0, %s1778_s26  ;;  %s219_s7 = sshll.u32 %s210_s6, 4  ;;  %s220_s7 = int_to_ptr.vmem [resolvable:$true] %s219_s7 }
  0x1a   : > { %s217_s8 = sshll.u32 %s215_s30, 4  ;;  %p2302_p2 = pnand %p1809_p5, %p38_p7  ;;  %s218_s8 = int_to_ptr.hbm [resolvable:$true] %s217_s8 }
  0x1b   : > { %s207_s10 = scalar_lea.sflag [#allocation4], %s206_s17  ;;  %s2036_s11 = sshra.s32 %s218_s8, 4  ;;  %s2037_s11 = int_to_ptr.hbm [resolvable:$true] %s2036_s11 }
  0x1c   : > { %s2038_s13 = scalar_lea.hbm %s2037_s11, 8  ;;  %p2040_p11 = pneg %p2302_p2 }
  0x1d   : > { %p2039_p10 = scmp.ne.s32.totalorder %s2037_s11, %s2038_s13  ;;  %s2043_s26 = scalar_lea.hbm %s2910_s0, 16 }
  0x1e   : > { %p2044_p0 = scmp.lt.s32.totalorder %s2037_s11, %s2910_s0  ;;  %p2045_p5 = scmp.lt.s32.totalorder %s2043_s26, %s2038_s13 }
  0x1f   : > { %p2041_p12 = pnand %p2040_p11, %p2039_p10 }
  0x20   : > { %p2046_p7 = por %p2045_p5, %p2044_p0 }
  0x21   : > { %p2042_p13 = pneg %p2041_p12 }
  0x23   : > { %p2047_p9 = pnand %p2046_p7, %p2042_p13 }
  0x25   : > { %2050 = shalt.err (!%p2047_p9)
}
  0x26   : > { %1802 = dma.hbm_to_vmem [thread:$0]  (!%p2302_p2), %s218_s8, 128, %s220_s7, %s207_s10  }
  0x27   : > { %228 = sbr.rel (%p2266_p8) target bundleno = 1393 (0x571), region = 40  ;;  %s2319_s17 = sand.u32 (!%p2266_p8), 1, %s2128_s19  }
  0x28   : > { %s1769_s30 = sshll.u32 (!%p2266_p8), %s2319_s17, 3  ;;  %s231_s6 = scalar_lea.sflag (!%p2266_p8), [#allocation4], %s2319_s17 }
  0x29   : > { %s234_s11 = scalar_lea.vmem (!%p2266_p8), [#allocation3], %s1769_s30 }
  0x2c   : > { %2111 = dma.done.wait (%p2253_p4), %s231_s6, 128  }
  0x2d   : > { %2113 = vsyncadd (%p2253_p4), %s231_s6, 4294967168 }
  0x2e   : > { %2115 = dma.done.wait (%p43_p1), [#allocation7], 128  }
  0x2f   : > { %2117 = vsyncadd (%p43_p1), [#allocation7], 4294967168  ;;  %v2140_v0 = vmov 0.0   ;;  %v2141_v1 = vmov 1   ;;  %v2142_v2 = vmov 0   ;;  %v2333_v3 = vld [vmem:[%s234_s11] sm:$0xff] }
  0x30   : > { %272 = vst [vmem:[#allocation2] sm:$0xf] %v2140_v0  ;;  %1902 = vset.pattern.permute.xlu1 %v2141_v1  ;;  %1901 = vset.pattern.permute.xlu2 %v2142_v2  ;;  %v291_v4 = vld [vmem:[%s2913_s3] sm:$0xf]  ;;  %v2343_v6 = vld [vmem:[#allocation8] sm:$0xf] }
  0x31   : > { %273 = vst [vmem:[#allocation2 + $0xc] sm:$0xf] %v2140_v0  ;;  %1900 = vset.pattern.permute.xlu0 %v2142_v2  ;;  %v2338_v5 = vld [vmem:[#allocation6] sm:$0xf]  ;;  %s2143_s24 = smov 17   ;;  %v2144_v8 = vmov 2  }
  0x32   : > { %275 = vst [vmem:[#allocation2 + $0x4] sm:$0xff] %v2333_v3  ;;  %294 = vperm.xlu0 %1900, %v291_v4   ;;  %357 = vperm.xlu1 %1902, %v2338_v5   ;;  %s2145_s8 = smov 34   ;;  %v2146_v10 = vmov 3   ;;  %v2147_v11 = vmov 4   ;;  %v2148_v12 = vmov 5   ;;  %v2149_v13 = vmov 6  }
  0x33   : > { %326 = vperm.xlu2 %1901, %v2338_v5   ;;  %v2150_v14 = vmov 7   ;;  %v2386_v30 = vld [vmem:[%s2914_s4] sm:$0xff]  ;;  %s2151_s13 = smov 16   ;;  %vm307_vm4 = vcmask 1043456   ;;  %vm320_vm5 = vcmask 277504   ;;  %vm309_vm7 = vcmask 138240  }
  0x34   : > { %vm277_vm0 = vcmp.ge.s32.totalorder %v2386_v30, 2  ;;  %vm278_vm1 = vcmp.lt.s32.totalorder %v2386_v30, 18  ;;  %vm280_vm2 = vcmp.ge.s32.totalorder %v2386_v30, 1  ;;  %vm281_vm3 = vcmp.lt.s32.totalorder %v2386_v30, 17  ;;  %s2152_s14 = smov 32   ;;  %s2153_s23 = smov 15  }
  0x35   : > { %vm2401_vm6 = vmand %vm277_vm0, %vm278_vm1  ;;  %vm465_vm9 = vcmask 130048   ;;  %vm488_vm10 = vcmask 261120   ;;  %s2157_s26 = smov 2   ;;  %s2158_s27 = smov 30   ;;  %vm283_vm11 = vcmp.ge.s32.totalorder %v2386_v30, 4294967295  ;;  %vm284_vm12 = vcmp.lt.s32.totalorder %v2386_v30, 15 }
  0x36   : > { %vm2405_vm8 = vmand %vm280_vm2, %vm281_vm3  ;;  %s2163_s28 = smov 1   ;;  %s2165_s6 = smov 127   ;;  %vm661_vm13 = vcmask 121856   ;;  %vm286_vm15 = vcmp.ge.s32.totalorder %v2386_v30, 4294967294  ;;  %vm287_vm0 = vcmp.lt.s32.totalorder %v2386_v30, 14  ;;  %vm672_vm1 = vcmask 244736  }
  0x37   : > { %s2166_s11 = smov 126   ;;  %vm2561_vm14 = vmand %vm283_vm11, %vm284_vm12  ;;  %s2177_s29 = smov 113   ;;  %vm797_vm3 = vcmask 7168   ;;  %vm1340_vm11 = vcmask 785408   ;;  %vm1513_vm12 = vcmask 908288  }
  0x38   : > { %vm2602_vm2 = vmand %vm286_vm15, %vm287_vm0  ;;  %s2179_s7 = smov 98   ;;  %s2189_s9 = smov 111  }
  0x39   : > { %v2345_v7 = vld [vmem:[#allocation2 + $0x8] sm:$0xf]  ;;  %v2350_v9 = vld [vmem:[#allocation2] sm:$0xff]  ;;  %s2190_s10 = smov 94  }
  0x3a   : > { %342 = vperm.xlu0 %1900, %v2343_v6   ;;  %303 = vrot.lane.b32.xlu1 %v2345_v7, %s2143_s24  ;;  %v446_v21 = vperm.slane %v2345_v7, 0  ;;  %v445_v22 = vperm.slane %v2350_v9, 4  ;;  %v444_v23 = vperm.slane %v2350_v9, 0  ;;  %v499_v34 = vperm.slane %v2350_v9, 1 }
  0x3b   : > { %1903 = vset.pattern.permute.xlu2 %v2141_v1  ;;  %1905 = vset.pattern.permute.xlu1 %v2144_v8  ;;  %v552_v54 = vperm.slane %v2350_v9, 2 }
  0x3c   : > { %371 = vperm.xlu2 %1903, %v2343_v6   ;;  %v2377_v26 = vperm.slane %v446_v21, 0  ;;  %v2379_v27 = vperm.slane %v445_v22, 0  ;;  %v2381_v28 = vperm.slane %v444_v23, 0  ;;  %v2399_v38 = vperm.slane %v499_v34, 1 }
  0x3d   : > { %v2425_v63 = vperm.slane %v552_v54, 2  ;;  %v605_v21 = vperm.slane %v2350_v9, 3  ;;  %v501_v34 = vperm.slane %v2345_v7, 1 }
  0x42   : > { %313 = vrot.lane.b32.xlu1 %v2350_v9, %s2145_s8  ;;  %301 = vrot.lane.b32.xlu0 %v2350_v9, %s2143_s24  ;;  %s2182_s24 = smov 112  }
  0x43   : > { %1904 = vset.pattern.permute.xlu0 %v2144_v8 }
  0x44   : > { %315 = vrot.lane.b32.xlu2 %v2345_v7, %s2145_s8  ;;  %s2184_s8 = smov 96  }
  0x45   : > { %1906 = vset.pattern.permute.xlu2 %v2146_v10 }
  0x4a   : > { %399 = vperm.xlu1 %1905, %v2343_v6   ;;  %385 = vperm.xlu0 %1904, %v2338_v5  }
  0x4c   : > { %413 = vperm.xlu2 %1906, %v2338_v5  }
  0x52   : > { %1907 = vset.pattern.permute.xlu1 %v2146_v10  ;;  %1909 = vset.pattern.permute.xlu0 %v2147_v11 }
  0x53   : > { %427 = vperm.xlu1 %1907, %v2343_v6   ;;  %473 = vperm.xlu0 %1909, %v2343_v6  }
  0x54   : > { %1908 = vset.pattern.permute.xlu2 %v2147_v11 }
  0x55   : > { %441 = vperm.xlu2 %1908, %v2338_v5  }
  0x5b   : > { %1911 = vset.pattern.permute.xlu0 %v2148_v12 }
  0x5c   : > { %527 = vperm.xlu0 %1911, %v2343_v6  }
  0x5d   : > { %1910 = vset.pattern.permute.xlu2 %v2148_v12 }
  0x5e   : > { %496 = vperm.xlu2 %1910, %v2338_v5  }
  0x64   : > { %1913 = vset.pattern.permute.xlu0 %v2149_v13 }
  0x65   : > { %580 = vperm.xlu0 %1913, %v2343_v6  }
  0x66   : > { %1912 = vset.pattern.permute.xlu2 %v2149_v13 }
  0x67   : > { %549 = vperm.xlu2 %1912, %v2338_v5  }
  0x6d   : > { %1915 = vset.pattern.permute.xlu0 %v2150_v14 }
  0x6f   : > { %1914 = vset.pattern.permute.xlu2 %v2150_v14 }
  0x70   : > { %602 = vperm.xlu2 %1914, %v2338_v5  }
  0x8d   : > { %v2366_v15 = vpop.permute.xlu2 %326 }
  0x96   : > { %v2368_v16 = vpop.permute.xlu2 %371 }
  0x9e   : > { %v316_v17 = vpop.permute.xlu2 %315 }
  0x9f   : > { %v318_v39 = vrot.slane %v316_v17, 4 }
  0xa4   : > { %v295_v18 = vpop.permute.xlu0 %294  ;;  %v2370_v19 = vpop.permute.xlu1 %357 }
  0xa6   : > { %v2372_v20 = vpop.permute.xlu2 %413 }
  0xac   : > { %v343_v24 = vpop.permute.xlu0 %342  ;;  %v304_v25 = vpop.permute.xlu1 %303 }
  0xad   : > { %v306_v35 = vrot.slane %v304_v25, 4 }
  0xaf   : > { %v442_v29 = vpop.permute.xlu2 %441 }
  0xb0   : > { %v455_v31 = vmul.f32 %v2377_v26, %v442_v29  ;;  %v454_v32 = vmul.f32 %v2379_v27, %v442_v29  ;;  %v453_v33 = vmul.f32 %v2381_v28, %v442_v29 }
  0xb2   : > { %463 = vrot.lane.b32.xlu2 %v455_v31, %s2151_s13  ;;  %461 = vrot.lane.b32.xlu1 %v454_v32, %s2151_s13 }
  0xb3   : > { %459 = vrot.lane.b32.xlu0 %v453_v33, %s2151_s13 }
  0xb4   : > { %v314_v36 = vpop.permute.xlu1 %313  ;;  %v302_v37 = vpop.permute.xlu0 %301 }
  0xb5   : > { %v317_v41 = vrot.slane %v314_v36, 4  ;;  %v305_v42 = vrot.slane %v302_v37, 4 }
  0xb7   : > { %v319_v44 = vsel %vm307_vm4, %v317_v41, %v318_v39  ;;  %v308_v45 = vsel %vm307_vm4, %v305_v42, %v306_v35  ;;  %v2444_v39 = vperm.slane %v605_v21, 3 }
  0xb8   : > { %v321_v46 = vsel %vm320_vm5, %v314_v36, %v319_v44  ;;  %v310_v47 = vsel %vm309_vm7, %v302_v37, %v308_v45  ;;  %v2411_v48 = vpop.permute.xlu2 %496  ;;  %vm808_vm5 = vcmask 15360   ;;  %vm1038_vm7 = vcmask 1031168  }
  0xb9   : > { %v2415_v49 = vsel %vm2401_vm6, %v321_v46, 0.0  ;;  %v312_v50 = vsel %vm2405_vm8, %v310_v47, 0.0  ;;  %v508_v51 = vmul.f32 %v2399_v38, %v2411_v48  ;;  %v507_v46 = vperm.slane %v501_v34, 1 }
  0xba   : > { %v346_v52 = vperm.slane %v2415_v49, 0  ;;  %v347_v53 = vperm.slane %v2415_v49, 4  ;;  %v330_v55 = vperm.slane %v312_v50, 0  ;;  %v331_v58 = vperm.slane %v312_v50, 4 }
  0xbb   : > { %514 = vrot.lane.b32.xlu0 %v508_v51, %s2151_s13  ;;  %v360_v4 = vperm.slane %v312_v50, 1  ;;  %v361_v8 = vperm.slane %v312_v50, 5  ;;  %v388_v10 = vperm.slane %v312_v50, 2  ;;  %v389_v11 = vperm.slane %v312_v50, 6 }
  0xbc   : > { %v350_v56 = vperm.slane %v346_v52, 0  ;;  %v351_v57 = vperm.slane %v347_v53, 0  ;;  %v386_v59 = vpop.permute.xlu0 %385  ;;  %v334_v62 = vperm.slane %v330_v55, 0  ;;  %v335_v0 = vperm.slane %v331_v58, 0 }
  0xbd   : > { %v364_v14 = vperm.slane %v360_v4, 1  ;;  %v365_v23 = vperm.slane %v361_v8, 1  ;;  %v417_v41 = vperm.slane %v312_v50, 7  ;;  %v500_v55 = vperm.slane %v2350_v9, 5 }
  0xbe   : > { %v352_v60 = vmul.f32 %v350_v56, %v343_v24  ;;  %v353_v61 = vmul.f32 %v351_v57, %v343_v24  ;;  %v336_v13 = vmul.f32 %v334_v62, %v2366_v15  ;;  %v337_v22 = vmul.f32 %v335_v0, %v2366_v15 }
  0xbf   : > { %v392_v24 = vperm.slane %v388_v10, 2  ;;  %v366_v25 = vmul.f32 %v364_v14, %v2370_v19  ;;  %v367_v29 = vmul.f32 %v365_v23, %v2370_v19  ;;  %v416_v19 = vperm.slane %v312_v50, 3 }
  0xc0   : > { %v2427_v1 = vadd.f32 %v352_v60, %v295_v18  ;;  %v2429_v2 = vadd.f32 %v353_v61, %v295_v18  ;;  %v393_v18 = vperm.slane %v389_v11, 2  ;;  %v421_v45 = vperm.slane %v417_v41, 3 }
  0xc1   : > { %v2431_v12 = vpop.permute.xlu2 %549  ;;  %v394_v31 = vmul.f32 %v392_v24, %v386_v59  ;;  %v368_v35 = vadd.f32 %v366_v25, %v336_v13  ;;  %v369_v15 = vadd.f32 %v367_v29, %v337_v22  ;;  %v420_v51 = vperm.slane %v416_v19, 3 }
  0xc2   : > { %v561_v17 = vmul.f32 %v2425_v63, %v2431_v12  ;;  %v395_v32 = vmul.f32 %v393_v18, %v386_v59  ;;  %v510_v50 = vmul.f32 %v507_v46, %v2411_v48  ;;  %v506_v58 = vperm.slane %v500_v55, 1 }
  0xc3   : > { %v396_v42 = vadd.f32 %v394_v31, %v368_v35  ;;  %v422_v53 = vmul.f32 %v420_v51, %v2372_v20  ;;  %v553_v62 = vperm.slane %v2350_v9, 6  ;;  %v607_v11 = vperm.slane %v2345_v7, 3 }
  0xc4   : > { %567 = vrot.lane.b32.xlu0 %v561_v17, %s2151_s13  ;;  %v397_v44 = vadd.f32 %v395_v32, %v369_v15  ;;  %v606_v22 = vperm.slane %v2350_v9, 7  ;;  %v2154_v25 = vmov 8   ;;  %v402_v41 = vperm.slane %v2415_v49, 2 }
  0xc5   : > { %v474_v33 = vpop.permute.xlu0 %473  ;;  %v424_v56 = vadd.f32 %v422_v53, %v396_v42  ;;  %v559_v4 = vperm.slane %v553_v62, 2  ;;  %1917 = vset.pattern.permute.xlu1 %v2154_v25  ;;  %v430_v42 = vperm.slane %v2415_v49, 3  ;;  %v375_v19 = vperm.slane %v2415_v49, 5 }
  0xc6   : > { %v476_v36 = vmul.f32 %v474_v33, %v2381_v28  ;;  %v477_v37 = vmul.f32 %v474_v33, %v2379_v27  ;;  %v423_v27 = vmul.f32 %v421_v45, %v2372_v20  ;;  %v478_v52 = vmul.f32 %v474_v33, %v2377_v26 }
  0xc7   : > { %v509_v26 = vmul.f32 %v506_v58, %v2411_v48  ;;  %v554_v20 = vperm.slane %v2345_v7, 2  ;;  %v562_v13 = vmul.f32 %v559_v4, %v2431_v12  ;;  %v612_v23 = vperm.slane %v606_v22, 3 }
  0xc8   : > { %484 = vrot.lane.b32.xlu2 %v477_v37, %s2152_s14  ;;  %482 = vrot.lane.b32.xlu1 %v476_v36, %s2152_s14  ;;  %v425_v54 = vadd.f32 %v423_v27, %v397_v44  ;;  %v374_v36 = vperm.slane %v2415_v49, 1  ;;  %v406_v45 = vperm.slane %v402_v41, 2  ;;  %v379_v51 = vperm.slane %v375_v19, 1 }
  0xc9   : > { %v560_v60 = vperm.slane %v554_v20, 2  ;;  %v431_v55 = vperm.slane %v2415_v49, 7  ;;  %v2156_v62 = vmov 10  }
  0xca   : > { %v603_v47 = vpop.permute.xlu2 %602  ;;  %v378_v15 = vperm.slane %v374_v36, 1 }
  0xcb   : > { %v614_v28 = vmul.f32 %v2444_v39, %v603_v47  ;;  %v563_v0 = vmul.f32 %v560_v60, %v2431_v12  ;;  %v615_v24 = vmul.f32 %v612_v23, %v603_v47  ;;  %v400_v12 = vpop.permute.xlu1 %399  ;;  %v435_v20 = vperm.slane %v431_v55, 3 }
  0xcc   : > { %v380_v44 = vmul.f32 %v378_v15, %v2368_v16  ;;  %v408_v27 = vmul.f32 %v406_v45, %v400_v12 }
  0xcd   : > { %620 = vrot.lane.b32.xlu0 %v614_v28, %s2151_s13  ;;  %v403_v28 = vperm.slane %v2415_v49, 6 }
  0xce   : > { %v528_v57 = vpop.permute.xlu0 %527 }
  0xcf   : > { %v531_v59 = vmul.f32 %v528_v57, %v506_v58  ;;  %v530_v61 = vmul.f32 %v528_v57, %v2399_v38  ;;  %v532_v8 = vmul.f32 %v528_v57, %v507_v46  ;;  %v2472_v38 = vperm.slane %v607_v11, 3 }
  0xd0   : > { %518 = vrot.lane.b32.xlu2 %v510_v50, %s2151_s13  ;;  %486 = vrot.lane.b32.xlu1 %v478_v52, %s2152_s14  ;;  %v382_v46 = vadd.f32 %v380_v44, %v2427_v1  ;;  %v381_v50 = vmul.f32 %v379_v51, %v2368_v16 }
  0xd1   : > { %v616_v14 = vmul.f32 %v2472_v38, %v603_v47  ;;  %v434_v47 = vperm.slane %v430_v42, 3  ;;  %v2160_v42 = vmov 15  }
  0xd3   : > { %v428_v18 = vpop.permute.xlu1 %427 }
  0xd4   : > { %v436_v52 = vmul.f32 %v434_v47, %v428_v18 }
  0xd5   : > { %633 = vperm.xlu0 %1915, %v2343_v6  }
  0xd7   : > { %v581_v48 = vpop.permute.xlu0 %580 }
  0xd8   : > { %538 = vrot.lane.b32.xlu2 %v531_v59, %s2152_s14  ;;  %516 = vrot.lane.b32.xlu1 %v509_v26, %s2151_s13  ;;  %v584_v10 = vmul.f32 %v581_v48, %v559_v4  ;;  %v583_v17 = vmul.f32 %v581_v48, %v2425_v63  ;;  %v585_v21 = vmul.f32 %v581_v48, %v560_v60 }
  0xd9   : > { %v383_v26 = vadd.f32 %v381_v50, %v2429_v2  ;;  %v437_v48 = vmul.f32 %v435_v20, %v428_v18  ;;  %v2169_v20 = vmov 21  }
  0xdd   : > { %656 = vrot.lane.b32.xlu0 %v2345_v7, %s2153_s23 }
  0xde   : > { %1916 = vset.pattern.permute.xlu0 %v2154_v25 }
  0xe0   : > { %571 = vrot.lane.b32.xlu2 %v563_v0, %s2151_s13  ;;  %536 = vrot.lane.b32.xlu1 %v530_v61, %s2152_s14  ;;  %v2155_v61 = vmov 9  }
  0xe1   : > { %1918 = vset.pattern.permute.xlu2 %v2155_v61 }
  0xe5   : > { %677 = vperm.xlu0 %1916, %v2338_v5  }
  0xe8   : > { %591 = vrot.lane.b32.xlu2 %v584_v10, %s2152_s14  ;;  %540 = vrot.lane.b32.xlu1 %v532_v8, %s2152_s14 }
  0xed   : > { %1921 = vset.pattern.permute.xlu0 %v2156_v62 }
  0xee   : > { %749 = vperm.xlu0 %1921, %v2343_v6  }
  0xf0   : > { %624 = vrot.lane.b32.xlu2 %v616_v14, %s2151_s13  ;;  %569 = vrot.lane.b32.xlu1 %v562_v13, %s2151_s13 }
  0xf6   : > { %801 = vrot.lane.b32.xlu0 %v2350_v9, %s2157_s26 }
  0xf8   : > { %589 = vrot.lane.b32.xlu1 %v583_v17, %s2152_s14 }
 0x100   : > { %593 = vrot.lane.b32.xlu1 %v585_v21, %s2152_s14 }
 0x108   : > { %622 = vrot.lane.b32.xlu1 %v615_v24, %s2151_s13  ;;  %s1779_s13 = sshll.u32 %s2244_s22, 3  ;;  %s1655_s22 = scalar_lea.sflag [#allocation5], %s2319_s17 }
 0x10c   : > { %v464_v63 = vpop.permute.xlu2 %463 }
 0x122   : > { %v485_v57 = vpop.permute.xlu2 %484 }
 0x124   : > { %v462_v29 = vpop.permute.xlu1 %461 }
 0x125   : > { %v467_v31 = vsel %vm465_vm9, %v462_v29, %v464_v63  ;;  %v460_v32 = vpop.permute.xlu0 %459 }
 0x126   : > { %v471_v33 = vadd.f32 %v467_v31, %v425_v54  ;;  %v466_v34 = vsel %vm465_vm9, %v460_v32, %v462_v29  ;;  %v410_v54 = vadd.f32 %v408_v27, %v382_v46 }
 0x127   : > { %v470_v35 = vadd.f32 %v466_v34, %v424_v56  ;;  %v407_v56 = vperm.slane %v403_v28, 2  ;;  %v2161_v28 = vmov 11  }
 0x128   : > { %v438_v58 = vadd.f32 %v436_v52, %v410_v54  ;;  %v2162_v52 = vmov 17  }
 0x129   : > { %v409_v0 = vmul.f32 %v407_v56, %v400_v12 }
 0x12a   : > { %v519_v13 = vpop.permute.xlu2 %518 }
 0x12b   : > { %v411_v16 = vadd.f32 %v409_v0, %v383_v26 }
 0x12d   : > { %v515_v37 = vpop.permute.xlu0 %514  ;;  %v439_v4 = vadd.f32 %v437_v48, %v411_v16 }
 0x132   : > { %v539_v63 = vpop.permute.xlu2 %538 }
 0x136   : > { %v568_v53 = vpop.permute.xlu0 %567 }
 0x13a   : > { %v483_v59 = vpop.permute.xlu1 %482  ;;  %v572_v34 = vpop.permute.xlu2 %571 }
 0x13b   : > { %v489_v1 = vsel %vm488_vm10, %v483_v59, %v485_v57  ;;  %v2543_v59 = vld [vmem:[#allocation2 + $0xc] sm:$0xf] }
 0x13c   : > { %v493_v60 = vadd.f32 %v489_v1, %v438_v58  ;;  %v2164_v58 = vmov 13  }
 0x13f   : > { %v2498_v49 = vpop.permute.xlu0 %620 }
 0x142   : > { %v487_v8 = vpop.permute.xlu1 %486  ;;  %v592_v19 = vpop.permute.xlu2 %591 }
 0x143   : > { %v490_v10 = vsel %vm488_vm10, %v485_v57, %v487_v8 }
 0x144   : > { %v494_v2 = vadd.f32 %v490_v10, %v439_v4 }
 0x147   : > { %v634_v11 = vpop.permute.xlu0 %633 }
 0x148   : > { %v636_v14 = vmul.f32 %v634_v11, %v2444_v39  ;;  %v637_v17 = vmul.f32 %v634_v11, %v612_v23  ;;  %v638_v25 = vmul.f32 %v634_v11, %v2472_v38  ;;  %v2159_v38 = vmov 12  }
 0x149   : > { %1925 = vset.pattern.permute.xlu0 %v2159_v38 }
 0x14a   : > { %644 = vrot.lane.b32.xlu2 %v637_v17, %s2152_s14  ;;  %642 = vrot.lane.b32.xlu1 %v636_v14, %s2152_s14  ;;  %v517_v21 = vpop.permute.xlu1 %516 }
 0x14b   : > { %v520_v22 = vsel %vm465_vm9, %v515_v37, %v517_v21  ;;  %v521_v24 = vsel %vm465_vm9, %v517_v21, %v519_v13  ;;  %828 = vperm.xlu0 %1925, %v2343_v6  }
 0x14c   : > { %v524_v12 = vadd.f32 %v520_v22, %v470_v35  ;;  %v525_v18 = vadd.f32 %v521_v24, %v471_v33 }
 0x14f   : > { %v657_v1 = vpop.permute.xlu0 %656 }
 0x152   : > { %654 = vrot.lane.b32.xlu2 %v2350_v9, %s2153_s23  ;;  %646 = vrot.lane.b32.xlu1 %v638_v25, %s2152_s14  ;;  %v537_v39 = vpop.permute.xlu1 %536  ;;  %v2171_v25 = vmov 19  }
 0x153   : > { %v542_v23 = vsel %vm488_vm10, %v537_v39, %v539_v63  ;;  %1930 = vset.pattern.permute.xlu0 %v2160_v42 }
 0x154   : > { %v546_v29 = vadd.f32 %v542_v23, %v493_v60  ;;  %899 = vperm.xlu0 %1930, %v2338_v5   ;;  %v659_v60 = vrot.slane %v657_v1, 4 }
 0x15a   : > { %667 = vrot.lane.b32.xlu2 %v2345_v7, %s2158_s27  ;;  %665 = vrot.lane.b32.xlu1 %v2350_v9, %s2158_s27  ;;  %v541_v31 = vpop.permute.xlu1 %540  ;;  %s271_s27 = scalar_lea.vmem [#allocation9], %s1769_s30  ;;  %s2086_s30 = scalar_lea.hbm %s2915_s5, 16 }
 0x15b   : > { %v543_v32 = vsel %vm488_vm10, %v539_v63, %v541_v31  ;;  %v2172_v31 = vmov 23  }
 0x15c   : > { %v547_v33 = vadd.f32 %v543_v32, %v494_v2  ;;  %1935 = vset.pattern.permute.xlu0 %v2162_v52  ;;  %v678_v2 = vpop.permute.xlu0 %677 }
 0x15d   : > { %965 = vperm.xlu0 %1935, %v2343_v6  }
 0x162   : > { %707 = vperm.xlu2 %1918, %v2338_v5   ;;  %692 = vperm.xlu1 %1917, %v2343_v6   ;;  %v570_v35 = vpop.permute.xlu1 %569 }
 0x163   : > { %v573_v36 = vsel %vm465_vm9, %v568_v53, %v570_v35  ;;  %v574_v37 = vsel %vm465_vm9, %v570_v35, %v572_v34  ;;  %v625_v53 = vpop.permute.xlu2 %624 }
 0x164   : > { %v577_v15 = vadd.f32 %v573_v36, %v524_v12  ;;  %v578_v41 = vadd.f32 %v574_v37, %v525_v18 }
 0x165   : > { %1020 = vrot.lane.b32.xlu0 %v2333_v3, %s2165_s6 }
 0x166   : > { %1942 = vset.pattern.permute.xlu0 %v2169_v20 }
 0x16a   : > { %1920 = vset.pattern.permute.xlu2 %v2156_v62  ;;  %1919 = vset.pattern.permute.xlu1 %v2155_v61  ;;  %v590_v44 = vpop.permute.xlu1 %589 }
 0x16b   : > { %v595_v45 = vsel %vm488_vm10, %v590_v44, %v592_v19  ;;  %735 = vperm.xlu2 %1920, %v2338_v5   ;;  %721 = vperm.xlu1 %1919, %v2343_v6  }
 0x16c   : > { %v2525_v46 = vadd.f32 %v595_v45, %v546_v29 }
 0x16d   : > { %1033 = vrot.lane.b32.xlu0 %v2543_v59, %s2166_s11 }
 0x172   : > { %v594_v47 = vpop.permute.xlu1 %593 }
 0x173   : > { %v596_v51 = vsel %vm488_vm10, %v592_v19, %v594_v47  ;;  %1923 = vset.pattern.permute.xlu2 %v2161_v28  ;;  %1922 = vset.pattern.permute.xlu1 %v2161_v28  ;;  %v2173_v19 = vmov 20  }
 0x174   : > { %v2528_v27 = vadd.f32 %v596_v51, %v547_v33  ;;  %777 = vperm.xlu2 %1923, %v2343_v6   ;;  %763 = vperm.xlu1 %1922, %v2338_v5  }
 0x175   : > { %1073 = vperm.xlu0 %1942, %v2338_v5  }
 0x17a   : > { %v623_v54 = vpop.permute.xlu1 %622 }
 0x17b   : > { %v626_v55 = vsel %vm465_vm9, %v2498_v49, %v623_v54  ;;  %v627_v50 = vsel %vm465_vm9, %v623_v54, %v625_v53  ;;  %v2170_v49 = vmov 18   ;;  %v2174_v54 = vmov 24  }
 0x17c   : > { %v630_v56 = vadd.f32 %v626_v55, %v577_v15  ;;  %v631_v57 = vadd.f32 %v627_v50, %v578_v41  ;;  %792 = vrot.lane.b32.xlu2 %v2345_v7, %s2163_s28  ;;  %790 = vrot.lane.b32.xlu1 %v2350_v9, %s2163_s28  ;;  %v2167_v9 = vmov 14   ;;  %vm1027_vm9 = vcmask 1039360   ;;  %s1668_s28 = sshll.u32 %s271_s27, 4  ;;  %s1669_s28 = int_to_ptr.vmem [resolvable:$true] %s1668_s28 }
 0x17d   : > { %1924 = vset.pattern.permute.xlu2 %v2159_v38  ;;  %1926 = vset.pattern.permute.xlu1 %v2164_v58 }
 0x17e   : > { %1947 = vset.pattern.permute.xlu0 %v2172_v31 }
 0x17f   : > { %1143 = vperm.xlu0 %1947, %v2343_v6  }
 0x184   : > { %813 = vperm.xlu2 %1924, %v2338_v5   ;;  %803 = vrot.lane.b32.xlu1 %v2345_v7, %s2157_s26  ;;  %v2168_v7 = vmov 16   ;;  %s1666_s26 = scalar_lea.hbm %s2915_s5, %s1779_s13 }
 0x187   : > { %1948 = vset.pattern.permute.xlu0 %v2174_v54 }
 0x188   : > { %1179 = vperm.xlu0 %1948, %v2338_v5  }
 0x18c   : > { %1927 = vset.pattern.permute.xlu2 %v2164_v58  ;;  %843 = vperm.xlu1 %1926, %v2338_v5  }
 0x18d   : > { %857 = vperm.xlu2 %1927, %v2343_v6  }
 0x194   : > { %1928 = vset.pattern.permute.xlu1 %v2167_v9 }
 0x195   : > { %1929 = vset.pattern.permute.xlu2 %v2167_v9  ;;  %871 = vperm.xlu1 %1928, %v2338_v5  }
 0x196   : > { %885 = vperm.xlu2 %1929, %v2343_v6  }
 0x19d   : > { %1931 = vset.pattern.permute.xlu1 %v2160_v42 }
 0x19e   : > { %1932 = vset.pattern.permute.xlu2 %v2168_v7  ;;  %913 = vperm.xlu1 %1931, %v2343_v6  }
 0x19f   : > { %928 = vperm.xlu2 %1932, %v2338_v5  }
 0x1a4   : > { %v2553_v26 = vpop.permute.xlu2 %644 }
 0x1a6   : > { %1933 = vset.pattern.permute.xlu1 %v2168_v7 }
 0x1a7   : > { %1934 = vset.pattern.permute.xlu2 %v2162_v52  ;;  %943 = vperm.xlu1 %1933, %v2343_v6  }
 0x1a8   : > { %951 = vperm.xlu2 %1934, %v2338_v5  }
 0x1ac   : > { %v655_v61 = vpop.permute.xlu2 %654 }
 0x1ad   : > { %v658_v62 = vrot.slane %v655_v61, 4 }
 0x1af   : > { %v660_v48 = vsel %vm307_vm4, %v658_v62, %v659_v60  ;;  %1936 = vset.pattern.permute.xlu1 %v2170_v49 }
 0x1b0   : > { %v662_v16 = vsel %vm661_vm13, %v655_v61, %v660_v48  ;;  %1937 = vset.pattern.permute.xlu2 %v2170_v49  ;;  %973 = vperm.xlu1 %1936, %v2338_v5   ;;  %v2175_v61 = vmov 22   ;;  %vm1524_vm13 = vcmask 769024  }
 0x1b1   : > { %v2569_v4 = vsel %vm2561_vm14, %v662_v16, 0.0  ;;  %987 = vperm.xlu2 %1937, %v2343_v6  }
 0x1b2   : > { %v681_v8 = vperm.slane %v2569_v4, 0  ;;  %v682_v10 = vperm.slane %v2569_v4, 4  ;;  %v710_v17 = vperm.slane %v2569_v4, 1  ;;  %v711_v21 = vperm.slane %v2569_v4, 5 }
 0x1b3   : > { %v738_v35 = vperm.slane %v2569_v4, 2  ;;  %v739_v36 = vperm.slane %v2569_v4, 6 }
 0x1b4   : > { %v668_v11 = vpop.permute.xlu2 %667  ;;  %v685_v13 = vperm.slane %v681_v8, 0  ;;  %v686_v14 = vperm.slane %v682_v10, 0  ;;  %v714_v63 = vperm.slane %v710_v17, 1  ;;  %v715_v39 = vperm.slane %v711_v21, 1 }
 0x1b5   : > { %v742_v41 = vperm.slane %v738_v35, 2  ;;  %v743_v42 = vperm.slane %v739_v36, 2  ;;  %v670_v55 = vrot.slane %v668_v11, 4  ;;  %v750_v11 = vpop.permute.xlu0 %749 }
 0x1b6   : > { %v687_v22 = vmul.f32 %v685_v13, %v678_v2  ;;  %v688_v24 = vmul.f32 %v686_v14, %v678_v2 }
 0x1b8   : > { %v689_v12 = vadd.f32 %v687_v22, %v630_v56  ;;  %v690_v18 = vadd.f32 %v688_v24, %v631_v57  ;;  %1938 = vset.pattern.permute.xlu1 %v2171_v25 }
 0x1b9   : > { %1939 = vset.pattern.permute.xlu2 %v2171_v25  ;;  %995 = vperm.xlu1 %1938, %v2338_v5  }
 0x1ba   : > { %1009 = vperm.xlu2 %1939, %v2343_v6  }
 0x1bc   : > { %v708_v23 = vpop.permute.xlu2 %707  ;;  %v643_v29 = vpop.permute.xlu1 %642 }
 0x1bd   : > { %v716_v32 = vmul.f32 %v714_v63, %v708_v23  ;;  %v717_v33 = vmul.f32 %v715_v39, %v708_v23  ;;  %v648_v38 = vsel %vm488_vm10, %v643_v29, %v2553_v26  ;;  %v2176_v29 = vmov 26  }
 0x1be   : > { %v652_v34 = vadd.f32 %v648_v38, %v2525_v46  ;;  %1953 = vset.pattern.permute.xlu0 %v2176_v29 }
 0x1bf   : > { %v718_v37 = vadd.f32 %v716_v32, %v689_v12  ;;  %v719_v15 = vadd.f32 %v717_v33, %v690_v18  ;;  %1251 = vperm.xlu0 %1953, %v2343_v6  }
 0x1c1   : > { %1022 = vrot.lane.b32.xlu1 %v2543_v59, %s2165_s6  ;;  %s1670_s6 = sshll.u32 %s1666_s26, 4  ;;  %s1671_s6 = int_to_ptr.hbm [resolvable:$true] %s1670_s6 }
 0x1c2   : > { %1031 = vrot.lane.b32.xlu2 %v2333_v3, %s2166_s11  ;;  %1940 = vset.pattern.permute.xlu1 %v2173_v19  ;;  %s2080_s11 = sshra.s32 %s1671_s6, 4  ;;  %s2081_s11 = int_to_ptr.hbm [resolvable:$true] %s2080_s11 }
 0x1c3   : > { %1941 = vset.pattern.permute.xlu2 %v2173_v19  ;;  %v802_v19 = vpop.permute.xlu0 %801  ;;  %p2087_p9 = scmp.lt.s32.totalorder %s2081_s11, %s2915_s5 }
 0x1c4   : > { %v647_v44 = vpop.permute.xlu1 %646 }
 0x1c5   : > { %v649_v45 = vsel %vm488_vm10, %v2553_v26, %v647_v44  ;;  %v736_v46 = vpop.permute.xlu2 %735  ;;  %vm1163_vm10 = vcmask 924672  }
 0x1c6   : > { %v653_v47 = vadd.f32 %v649_v45, %v2528_v27  ;;  %v744_v51 = vmul.f32 %v742_v41, %v736_v46  ;;  %v745_v28 = vmul.f32 %v743_v42, %v736_v46 }
 0x1c8   : > { %v2592_v52 = vadd.f32 %v744_v51, %v718_v37  ;;  %v2594_v53 = vadd.f32 %v745_v28, %v719_v15  ;;  %v766_v37 = vperm.slane %v2569_v4, 3  ;;  %v767_v15 = vperm.slane %v2569_v4, 7 }
 0x1c9   : > { %1043 = vperm.xlu1 %1940, %v2338_v5   ;;  %v2178_v28 = vmov 25  }
 0x1ca   : > { %1058 = vperm.xlu2 %1941, %v2343_v6   ;;  %v771_v46 = vperm.slane %v767_v15, 3 }
 0x1cc   : > { %v666_v27 = vpop.permute.xlu1 %665 }
 0x1cd   : > { %v669_v50 = vrot.slane %v666_v27, 4 }
 0x1ce   : > { %v778_v57 = vpop.permute.xlu2 %777 }
 0x1cf   : > { %v671_v58 = vsel %vm307_vm4, %v669_v50, %v670_v55 }
 0x1d0   : > { %v673_v9 = vsel %vm672_vm1, %v666_v27, %v671_v58 }
 0x1d1   : > { %v675_v7 = vsel %vm2602_vm2, %v673_v9, 0.0  ;;  %1943 = vset.pattern.permute.xlu1 %v2169_v20  ;;  %v2631_v9 = vpop.permute.xlu0 %828 }
 0x1d2   : > { %1087 = vperm.xlu1 %1943, %v2343_v6   ;;  %v780_v30 = vperm.slane %v675_v7, 3  ;;  %v781_v26 = vperm.slane %v675_v7, 7  ;;  %v696_v1 = vperm.slane %v675_v7, 0  ;;  %v697_v60 = vperm.slane %v675_v7, 4  ;;  %1944 = vset.pattern.permute.xlu2 %v2175_v61 }
 0x1d3   : > { %v752_v62 = vperm.slane %v675_v7, 2  ;;  %v753_v48 = vperm.slane %v675_v7, 6  ;;  %1101 = vperm.xlu2 %1944, %v2338_v5   ;;  %v724_v39 = vperm.slane %v675_v7, 1  ;;  %v725_v23 = vperm.slane %v675_v7, 5 }
 0x1d4   : > { %v784_v49 = vperm.slane %v780_v30, 3  ;;  %v785_v16 = vperm.slane %v781_v26, 3  ;;  %v700_v8 = vperm.slane %v696_v1, 0  ;;  %v701_v10 = vperm.slane %v697_v60, 0  ;;  %v693_v2 = vpop.permute.xlu1 %692 }
 0x1d5   : > { %v756_v13 = vperm.slane %v752_v62, 2  ;;  %v757_v20 = vperm.slane %v753_v48, 2  ;;  %v728_v32 = vperm.slane %v724_v39, 1  ;;  %v729_v33 = vperm.slane %v725_v23, 1 }
 0x1d6   : > { %v786_v14 = vmul.f32 %v784_v49, %v778_v57  ;;  %v787_v17 = vmul.f32 %v785_v16, %v778_v57  ;;  %v702_v21 = vmul.f32 %v700_v8, %v693_v2  ;;  %v703_v22 = vmul.f32 %v701_v10, %v693_v2  ;;  %v793_v24 = vpop.permute.xlu2 %792 }
 0x1d7   : > { %v758_v12 = vmul.f32 %v756_v13, %v750_v11  ;;  %v759_v18 = vmul.f32 %v757_v20, %v750_v11  ;;  %v795_v7 = vrot.slane %v793_v24, 4  ;;  %v805_v48 = vrot.slane %v802_v19, 4 }
 0x1d8   : > { %v704_v25 = vadd.f32 %v702_v21, %v652_v34  ;;  %v705_v63 = vadd.f32 %v703_v22, %v653_v47 }
 0x1d9   : > { %v900_v49 = vpop.permute.xlu0 %899 }
 0x1da   : > { %1945 = vset.pattern.permute.xlu1 %v2175_v61 }
 0x1db   : > { %1115 = vperm.xlu1 %1945, %v2343_v6   ;;  %1946 = vset.pattern.permute.xlu2 %v2172_v31  ;;  %v770_v31 = vperm.slane %v766_v37, 3 }
 0x1dc   : > { %1129 = vperm.xlu2 %1946, %v2338_v5  }
 0x1dd   : > { %v722_v38 = vpop.permute.xlu1 %721 }
 0x1de   : > { %v730_v35 = vmul.f32 %v728_v32, %v722_v38  ;;  %v731_v34 = vmul.f32 %v729_v33, %v722_v38  ;;  %v814_v36 = vpop.permute.xlu2 %813  ;;  %v2664_v33 = vld [vmem:[#allocation8] sm:$0xf] }
 0x1e0   : > { %v732_v41 = vadd.f32 %v730_v35, %v704_v25  ;;  %v733_v42 = vadd.f32 %v731_v34, %v705_v63 }
 0x1e2   : > { %v760_v44 = vadd.f32 %v758_v12, %v732_v41  ;;  %v761_v45 = vadd.f32 %v759_v18, %v733_v42  ;;  %v2672_v41 = vld [vmem:[#allocation6] sm:$0xf] }
 0x1e3   : > { %1156 = vrot.lane.b32.xlu1 %v2333_v3, %s2177_s29 }
 0x1e4   : > { %v2620_v47 = vadd.f32 %v786_v14, %v760_v44  ;;  %v2622_v51 = vadd.f32 %v787_v17, %v761_v45  ;;  %1158 = vrot.lane.b32.xlu2 %v2543_v59, %s2177_s29  ;;  %1949 = vset.pattern.permute.xlu1 %v2174_v54  ;;  %s2082_s29 = scalar_lea.hbm %s2081_s11, 8 }
 0x1e5   : > { %1950 = vset.pattern.permute.xlu2 %v2178_v28  ;;  %p2083_p1 = scmp.ne.s32.totalorder %s2081_s11, %s2082_s29  ;;  %p2088_p2 = scmp.lt.s32.totalorder %s2086_s30, %s2082_s29 }
 0x1e6   : > { %v764_v4 = vpop.permute.xlu1 %763 }
 0x1e7   : > { %v772_v55 = vmul.f32 %v770_v31, %v764_v4  ;;  %v773_v27 = vmul.f32 %v771_v46, %v764_v4  ;;  %v2626_v50 = vpop.permute.xlu2 %857  ;;  %p2084_p4 = pnand %p2083_p1, %p2289_p3  ;;  %p2089_p10 = por %p2088_p2, %p2087_p9 }
 0x1e9   : > { %v774_v57 = vadd.f32 %v772_v55, %v2592_v52  ;;  %v775_v58 = vadd.f32 %v773_v27, %v2594_v53  ;;  %p2085_p8 = pneg %p2084_p4 }
 0x1eb   : > { %1167 = vrot.lane.b32.xlu1 %v2333_v3, %s2179_s7  ;;  %p2090_p11 = pnand %p2089_p10, %p2085_p8 }
 0x1ec   : > { %1169 = vrot.lane.b32.xlu2 %v2543_v59, %s2179_s7 }
 0x1ee   : > { %v791_v54 = vpop.permute.xlu1 %790 }
 0x1ef   : > { %v794_v30 = vrot.slane %v791_v54, 4 }
 0x1f0   : > { %v2634_v26 = vpop.permute.xlu2 %885 }
 0x1f1   : > { %v796_v1 = vsel %vm307_vm4, %v794_v30, %v795_v7 }
 0x1f2   : > { %v798_v60 = vsel %vm797_vm3, %v791_v54, %v796_v1 }
 0x1f3   : > { %v2639_v52 = vsel %vm2405_vm8, %v798_v60, 0.0  ;;  %1194 = vperm.xlu1 %1949, %v2343_v6   ;;  %v2647_v6 = vld [vmem:[#allocation2 + $0x4] sm:$0xff] }
 0x1f4   : > { %v902_v3 = vperm.slane %v2639_v52, 3  ;;  %v903_v53 = vperm.slane %v2639_v52, 7  ;;  %1209 = vperm.xlu2 %1950, %v2338_v5   ;;  %v817_v61 = vperm.slane %v2639_v52, 0  ;;  %v818_v62 = vperm.slane %v2639_v52, 4 }
 0x1f5   : > { %v846_v24 = vperm.slane %v2639_v52, 1  ;;  %v847_v12 = vperm.slane %v2639_v52, 5  ;;  %v932_v25 = vperm.slane %v2647_v6, 0  ;;  %v933_v23 = vperm.slane %v2647_v6, 4 }
 0x1f6   : > { %v804_v16 = vpop.permute.xlu1 %803  ;;  %v906_v8 = vperm.slane %v902_v3, 3  ;;  %v907_v10 = vperm.slane %v903_v53, 3  ;;  %v821_v2 = vperm.slane %v817_v61, 0  ;;  %v822_v11 = vperm.slane %v818_v62, 0 }
 0x1f7   : > { %v806_v13 = vrot.slane %v804_v16, 4  ;;  %v850_v37 = vperm.slane %v846_v24, 1  ;;  %v851_v15 = vperm.slane %v847_v12, 1  ;;  %v874_v61 = vperm.slane %v2639_v52, 2 }
 0x1f8   : > { %v2649_v20 = vmul.f32 %v906_v8, %v900_v49  ;;  %v2651_v14 = vmul.f32 %v907_v10, %v900_v49  ;;  %v823_v5 = vmul.f32 %v821_v2, %v814_v36  ;;  %v824_v17 = vmul.f32 %v822_v11, %v814_v36  ;;  %v966_v8 = vpop.permute.xlu0 %965 }
 0x1f9   : > { %v807_v21 = vsel %vm307_vm4, %v805_v48, %v806_v13  ;;  %v2654_v22 = vpop.permute.xlu2 %928  ;;  %v875_v62 = vperm.slane %v2639_v52, 6  ;;  %v955_v16 = vperm.slane %v2647_v6, 5  ;;  %v936_v11 = vperm.slane %v932_v25, 0 }
 0x1fa   : > { %v809_v18 = vsel %vm808_vm5, %v802_v19, %v807_v21  ;;  %v825_v63 = vadd.f32 %v823_v5, %v774_v57  ;;  %v826_v32 = vadd.f32 %v824_v17, %v775_v58  ;;  %v878_v13 = vperm.slane %v874_v61, 2 }
 0x1fb   : > { %v2661_v39 = vsel %vm2401_vm6, %v809_v18, 0.0  ;;  %1951 = vset.pattern.permute.xlu1 %v2178_v28  ;;  %v879_v52 = vperm.slane %v875_v62, 2  ;;  %v959_v21 = vperm.slane %v955_v16, 1  ;;  %v938_v18 = vmul.f32 %v936_v11, %v2654_v22 }
 0x1fc   : > { %1223 = vperm.xlu1 %1951, %v2664_v33   ;;  %1952 = vset.pattern.permute.xlu2 %v2176_v29  ;;  %v832_v38 = vperm.slane %v2661_v39, 0  ;;  %v833_v35 = vperm.slane %v2661_v39, 4  ;;  %v860_v34 = vperm.slane %v2661_v39, 1  ;;  %v861_v36 = vperm.slane %v2661_v39, 5 }
 0x1fd   : > { %1237 = vperm.xlu2 %1952, %v2672_v41   ;;  %v888_v42 = vperm.slane %v2661_v39, 2  ;;  %v889_v19 = vperm.slane %v2661_v39, 6 }
 0x1fe   : > { %v844_v44 = vpop.permute.xlu1 %843  ;;  %v836_v29 = vperm.slane %v832_v38, 0  ;;  %v837_v45 = vperm.slane %v833_v35, 0  ;;  %v864_v31 = vperm.slane %v860_v34, 1  ;;  %v865_v46 = vperm.slane %v861_v36, 1 }
 0x1ff   : > { %v852_v28 = vmul.f32 %v850_v37, %v844_v44  ;;  %v853_v4 = vmul.f32 %v851_v15, %v844_v44  ;;  %v892_v55 = vperm.slane %v888_v42, 2  ;;  %v893_v27 = vperm.slane %v889_v19, 2 }
 0x200   : > { %v838_v57 = vmul.f32 %v836_v29, %v2631_v9  ;;  %v839_v58 = vmul.f32 %v837_v45, %v2631_v9  ;;  %v866_v7 = vmul.f32 %v864_v31, %v2626_v50  ;;  %v867_v54 = vmul.f32 %v865_v46, %v2626_v50  ;;  %v2698_v19 = vpop.permute.xlu0 %1020 }
 0x201   : > { %v854_v30 = vadd.f32 %v852_v28, %v825_v63  ;;  %v855_v1 = vadd.f32 %v853_v4, %v826_v32  ;;  %v894_v60 = vmul.f32 %v892_v55, %v2634_v26  ;;  %v895_v3 = vmul.f32 %v893_v27, %v2634_v26 }
 0x202   : > { %v952_v53 = vpop.permute.xlu2 %951  ;;  %v840_v48 = vadd.f32 %v838_v57, %v2620_v47  ;;  %v841_v49 = vadd.f32 %v839_v58, %v2622_v51  ;;  %v954_v9 = vperm.slane %v2647_v6, 1  ;;  %v2180_v50 = vmov 27  }
 0x203   : > { %v937_v26 = vperm.slane %v933_v23, 0  ;;  %v916_v38 = vperm.slane %v2661_v39, 3  ;;  %v917_v35 = vperm.slane %v2661_v39, 7  ;;  %v961_v36 = vmul.f32 %v959_v21, %v952_v53 }
 0x204   : > { %1954 = vset.pattern.permute.xlu1 %v2180_v50  ;;  %v868_v10 = vadd.f32 %v866_v7, %v840_v48  ;;  %v869_v2 = vadd.f32 %v867_v54, %v841_v49  ;;  %v958_v17 = vperm.slane %v954_v9, 1  ;;  %v2181_v42 = vmov 28  }
 0x205   : > { %1265 = vperm.xlu1 %1954, %v2672_v41   ;;  %1955 = vset.pattern.permute.xlu2 %v2180_v50  ;;  %v939_v63 = vmul.f32 %v937_v26, %v2654_v22  ;;  %v920_v29 = vperm.slane %v916_v38, 3  ;;  %v921_v45 = vperm.slane %v917_v35, 3  ;;  %v977_v27 = vperm.slane %v2647_v6, 6 }
 0x206   : > { %1279 = vperm.xlu2 %1955, %v2664_v33   ;;  %v896_v47 = vadd.f32 %v894_v60, %v868_v10  ;;  %v897_v51 = vadd.f32 %v895_v3, %v869_v2  ;;  %v960_v34 = vmul.f32 %v958_v17, %v952_v53  ;;  %v998_v58 = vperm.slane %v2647_v6, 3 }
 0x207   : > { %v872_v5 = vpop.permute.xlu1 %871  ;;  %v999_v7 = vperm.slane %v2647_v6, 7  ;;  %v968_v60 = vmul.f32 %v966_v8, %v958_v17  ;;  %v969_v3 = vmul.f32 %v966_v8, %v959_v21 }
 0x208   : > { %v880_v24 = vmul.f32 %v878_v13, %v872_v5  ;;  %v881_v12 = vmul.f32 %v879_v52, %v872_v5  ;;  %v1002_v61 = vperm.slane %v998_v58, 3 }
 0x209   : > { %v1003_v62 = vperm.slane %v999_v7, 3 }
 0x20a   : > { %v882_v25 = vadd.f32 %v880_v24, %v854_v30  ;;  %v883_v23 = vadd.f32 %v881_v12, %v855_v1  ;;  %v981_v30 = vperm.slane %v977_v27, 2  ;;  %v1034_v1 = vpop.permute.xlu0 %1033 }
 0x20b   : > { %v988_v32 = vpop.permute.xlu2 %987  ;;  %v1036_v9 = vrot.slane %v1034_v1, 4 }
 0x20c   : > { %v910_v37 = vadd.f32 %v2649_v20, %v882_v25  ;;  %v911_v15 = vadd.f32 %v2651_v14, %v883_v23  ;;  %v976_v14 = vperm.slane %v2647_v6, 2  ;;  %v991_v50 = vmul.f32 %v988_v32, %v981_v30 }
 0x20d   : > { %1956 = vset.pattern.permute.xlu1 %v2181_v42 }
 0x20e   : > { %1293 = vperm.xlu1 %1956, %v2672_v41   ;;  %v940_v22 = vadd.f32 %v938_v18, %v910_v37  ;;  %v941_v44 = vadd.f32 %v939_v63, %v911_v15  ;;  %1957 = vset.pattern.permute.xlu2 %v2181_v42  ;;  %v980_v54 = vperm.slane %v976_v14, 2 }
 0x210   : > { %v914_v31 = vpop.permute.xlu1 %913  ;;  %v962_v46 = vadd.f32 %v960_v34, %v940_v22  ;;  %v963_v39 = vadd.f32 %v961_v36, %v941_v44  ;;  %v990_v16 = vmul.f32 %v988_v32, %v980_v54 }
 0x211   : > { %v922_v28 = vmul.f32 %v920_v29, %v914_v31  ;;  %v923_v4 = vmul.f32 %v921_v45, %v914_v31 }
 0x212   : > { %v1074_v29 = vpop.permute.xlu0 %1073 }
 0x213   : > { %v924_v55 = vadd.f32 %v922_v28, %v896_v47  ;;  %v925_v20 = vadd.f32 %v923_v4, %v897_v51 }
 0x214   : > { %v1010_v57 = vpop.permute.xlu2 %1009 }
 0x215   : > { %v1012_v47 = vmul.f32 %v1010_v57, %v1002_v61  ;;  %v1013_v6 = vmul.f32 %v1010_v57, %v1003_v62 }
 0x219   : > { %v944_v53 = vpop.permute.xlu1 %943 }
 0x21a   : > { %v946_v48 = vmul.f32 %v944_v53, %v936_v11  ;;  %v947_v49 = vmul.f32 %v944_v53, %v937_v26  ;;  %v1144_v57 = vpop.permute.xlu0 %1143 }
 0x21c   : > { %v948_v10 = vadd.f32 %v946_v48, %v924_v55  ;;  %v949_v2 = vadd.f32 %v947_v49, %v925_v20  ;;  %v1032_v13 = vpop.permute.xlu2 %1031 }
 0x21d   : > { %v1035_v52 = vrot.slane %v1032_v13, 4 }
 0x21e   : > { %v970_v51 = vadd.f32 %v968_v60, %v948_v10  ;;  %v971_v5 = vadd.f32 %v969_v3, %v949_v2 }
 0x21f   : > { %v1037_v17 = vsel %vm307_vm4, %v1035_v52, %v1036_v9 }
 0x220   : > { %v1039_v8 = vsel %vm1038_vm7, %v1032_v13, %v1037_v17  ;;  %v992_v21 = vadd.f32 %v990_v16, %v970_v51  ;;  %v993_v24 = vadd.f32 %v991_v50, %v971_v5 }
 0x221   : > { %v2707_v11 = vsel %vm2602_vm2, %v1039_v8, 0.0 }
 0x222   : > { %v974_v26 = vpop.permute.xlu1 %973  ;;  %v1014_v12 = vadd.f32 %v1012_v47, %v992_v21  ;;  %v1015_v18 = vadd.f32 %v1013_v6, %v993_v24  ;;  %v1062_v63 = vperm.slane %v2707_v11, 0  ;;  %v1063_v25 = vperm.slane %v2707_v11, 4 }
 0x223   : > { %v982_v23 = vmul.f32 %v980_v54, %v974_v26  ;;  %v983_v32 = vmul.f32 %v981_v30, %v974_v26  ;;  %v1146_v14 = vperm.slane %v2707_v11, 3  ;;  %v1147_v27 = vperm.slane %v2707_v11, 7 }
 0x224   : > { %v1059_v38 = vpop.permute.xlu2 %1058  ;;  %v1066_v35 = vperm.slane %v1062_v63, 0  ;;  %v1067_v34 = vperm.slane %v1063_v25, 0  ;;  %v1091_v48 = vperm.slane %v2707_v11, 5 }
 0x225   : > { %v984_v36 = vadd.f32 %v982_v23, %v962_v46  ;;  %v985_v37 = vadd.f32 %v983_v32, %v963_v39  ;;  %v1024_v46 = vrot.slane %v2698_v19, 4  ;;  %v1150_v39 = vperm.slane %v1146_v14, 3 }
 0x226   : > { %v1068_v15 = vmul.f32 %v1066_v35, %v1059_v38  ;;  %v1069_v42 = vmul.f32 %v1067_v34, %v1059_v38  ;;  %v1151_v58 = vperm.slane %v1147_v27, 3 }
 0x227   : > { %v1152_v30 = vmul.f32 %v1150_v39, %v1144_v57  ;;  %v1118_v39 = vperm.slane %v2707_v11, 2 }
 0x228   : > { %v2711_v22 = vadd.f32 %v1068_v15, %v1014_v12  ;;  %v2713_v44 = vadd.f32 %v1069_v42, %v1015_v18  ;;  %v1153_v1 = vmul.f32 %v1151_v58, %v1144_v57  ;;  %v1119_v58 = vperm.slane %v2707_v11, 6 }
 0x22b   : > { %v996_v45 = vpop.permute.xlu1 %995 }
 0x22c   : > { %v1004_v31 = vmul.f32 %v1002_v61, %v996_v45  ;;  %v1005_v28 = vmul.f32 %v1003_v62, %v996_v45  ;;  %v1090_v62 = vperm.slane %v2707_v11, 1  ;;  %v1095_v45 = vperm.slane %v1091_v48, 1 }
 0x22d   : > { %v1102_v4 = vpop.permute.xlu2 %1101 }
 0x22e   : > { %v1006_v55 = vadd.f32 %v1004_v31, %v984_v36  ;;  %v1007_v20 = vadd.f32 %v1005_v28, %v985_v37  ;;  %v1094_v42 = vperm.slane %v1090_v62, 1 }
 0x233   : > { %v1023_v7 = vpop.permute.xlu1 %1022 }
 0x234   : > { %v1025_v54 = vrot.slane %v1023_v7, 4  ;;  %v1122_v7 = vperm.slane %v1118_v39, 2 }
 0x236   : > { %v1026_v60 = vsel %vm307_vm4, %v1024_v46, %v1025_v54  ;;  %v1130_v3 = vpop.permute.xlu2 %1129  ;;  %v1123_v54 = vperm.slane %v1119_v58, 2 }
 0x237   : > { %v1028_v53 = vsel %vm1027_vm9, %v2698_v19, %v1026_v60 }
 0x238   : > { %v1030_v61 = vsel %vm2561_vm14, %v1028_v53, 0.0 }
 0x239   : > { %v1104_v49 = vperm.slane %v1030_v61, 2  ;;  %v1105_v9 = vperm.slane %v1030_v61, 6  ;;  %v1047_v16 = vperm.slane %v1030_v61, 0  ;;  %v1048_v50 = vperm.slane %v1030_v61, 4 }
 0x23a   : > { %v1132_v10 = vperm.slane %v1030_v61, 3  ;;  %v1133_v2 = vperm.slane %v1030_v61, 7  ;;  %v1076_v13 = vperm.slane %v1030_v61, 1  ;;  %v1077_v52 = vperm.slane %v1030_v61, 5 }
 0x23b   : > { %v1108_v47 = vperm.slane %v1104_v49, 2  ;;  %v1109_v6 = vperm.slane %v1105_v9, 2  ;;  %v1044_v51 = vpop.permute.xlu1 %1043  ;;  %v1051_v5 = vperm.slane %v1047_v16, 0  ;;  %v1052_v19 = vperm.slane %v1048_v50, 0 }
 0x23c   : > { %v1136_v17 = vperm.slane %v1132_v10, 3  ;;  %v1137_v8 = vperm.slane %v1133_v2, 3  ;;  %v1080_v21 = vperm.slane %v1076_v13, 1  ;;  %v1081_v24 = vperm.slane %v1077_v52, 1 }
 0x23d   : > { %v1110_v26 = vmul.f32 %v1108_v47, %v1102_v4  ;;  %v1111_v12 = vmul.f32 %v1109_v6, %v1102_v4  ;;  %v1053_v18 = vmul.f32 %v1051_v5, %v1044_v51  ;;  %v1054_v63 = vmul.f32 %v1052_v19, %v1044_v51 }
 0x23e   : > { %v1138_v25 = vmul.f32 %v1136_v17, %v1130_v3  ;;  %v1139_v23 = vmul.f32 %v1137_v8, %v1130_v3  ;;  %v1082_v32 = vmul.f32 %v1080_v21, %v1074_v29  ;;  %v1083_v38 = vmul.f32 %v1081_v24, %v1074_v29  ;;  %v1159_v35 = vpop.permute.xlu2 %1158  ;;  %v1180_v21 = vpop.permute.xlu0 %1179 }
 0x23f   : > { %v1055_v34 = vadd.f32 %v1053_v18, %v1006_v55  ;;  %v1056_v36 = vadd.f32 %v1054_v63, %v1007_v20  ;;  %v1161_v16 = vrot.slane %v1159_v35, 4 }
 0x241   : > { %v1084_v37 = vadd.f32 %v1082_v32, %v1055_v34  ;;  %v1085_v15 = vadd.f32 %v1083_v38, %v1056_v36 }
 0x243   : > { %v1112_v31 = vadd.f32 %v1110_v26, %v1084_v37  ;;  %v1113_v28 = vadd.f32 %v1111_v12, %v1085_v15 }
 0x244   : > { %v1088_v14 = vpop.permute.xlu1 %1087 }
 0x245   : > { %v1096_v27 = vmul.f32 %v1094_v42, %v1088_v14  ;;  %v1097_v57 = vmul.f32 %v1095_v45, %v1088_v14  ;;  %v1140_v46 = vadd.f32 %v1138_v25, %v1112_v31  ;;  %v1141_v4 = vadd.f32 %v1139_v23, %v1113_v28 }
 0x246   : > { %v1170_v20 = vpop.permute.xlu2 %1169 }
 0x247   : > { %v1098_v29 = vadd.f32 %v1096_v27, %v2711_v22  ;;  %v1099_v55 = vadd.f32 %v1097_v57, %v2713_v44 }
 0x24d   : > { %v1116_v60 = vpop.permute.xlu1 %1115 }
 0x24e   : > { %v1124_v3 = vmul.f32 %v1122_v7, %v1116_v60  ;;  %v1125_v53 = vmul.f32 %v1123_v54, %v1116_v60  ;;  %v1210_v9 = vpop.permute.xlu2 %1209 }
 0x250   : > { %v1126_v61 = vadd.f32 %v1124_v3, %v1098_v29  ;;  %v1127_v62 = vadd.f32 %v1125_v53, %v1099_v55 }
 0x252   : > { %v1154_v48 = vadd.f32 %v1152_v30, %v1126_v61  ;;  %v1155_v49 = vadd.f32 %v1153_v1, %v1127_v62  ;;  %v1172_v1 = vrot.slane %v1170_v20, 4 }
 0x255   : > { %v1157_v50 = vpop.permute.xlu1 %1156 }
 0x256   : > { %v1160_v10 = vrot.slane %v1157_v50, 4 }
 0x257   : > { %v1238_v47 = vpop.permute.xlu2 %1237 }
 0x258   : > { %v1162_v11 = vsel %vm307_vm4, %v1160_v10, %v1161_v16  ;;  %v1252_v16 = vpop.permute.xlu0 %1251 }
 0x259   : > { %v1164_v22 = vsel %vm1163_vm10, %v1157_v50, %v1162_v11 }
 0x25a   : > { %v2731_v44 = vsel %vm2405_vm8, %v1164_v22, 0.0  ;;  %vm1174_vm8 = vcmask 801792  }
 0x25b   : > { %v1212_v2 = vperm.slane %v2731_v44, 1  ;;  %v1213_v13 = vperm.slane %v2731_v44, 5  ;;  %v1240_v52 = vperm.slane %v2731_v44, 2  ;;  %v1241_v30 = vperm.slane %v2731_v44, 6 }
 0x25c   : > { %v1183_v6 = vperm.slane %v2731_v44, 0  ;;  %v1184_v51 = vperm.slane %v2731_v44, 4 }
 0x25d   : > { %v1216_v5 = vperm.slane %v1212_v2, 1  ;;  %v1217_v19 = vperm.slane %v1213_v13, 1  ;;  %v1168_v17 = vpop.permute.xlu1 %1167  ;;  %v1244_v43 = vperm.slane %v1240_v52, 2  ;;  %v1245_v8 = vperm.slane %v1241_v30, 2 }
 0x25e   : > { %v1171_v24 = vrot.slane %v1168_v17, 4  ;;  %v1187_v26 = vperm.slane %v1183_v6, 0  ;;  %v1188_v12 = vperm.slane %v1184_v51, 0 }
 0x25f   : > { %v1218_v18 = vmul.f32 %v1216_v5, %v1210_v9  ;;  %v1219_v63 = vmul.f32 %v1217_v19, %v1210_v9  ;;  %v1246_v25 = vmul.f32 %v1244_v43, %v1238_v47  ;;  %v1247_v23 = vmul.f32 %v1245_v8, %v1238_v47 }
 0x260   : > { %v1173_v32 = vsel %vm307_vm4, %v1171_v24, %v1172_v1  ;;  %v1189_v38 = vmul.f32 %v1187_v26, %v1180_v21  ;;  %v1190_v35 = vmul.f32 %v1188_v12, %v1180_v21  ;;  %v1280_v13 = vpop.permute.xlu2 %1279  ;;  %v1269_v47 = vperm.slane %v2731_v44, 7 }
 0x261   : > { %v1175_v34 = vsel %vm1174_vm8, %v1168_v17, %v1173_v32 }
 0x262   : > { %v1177_v36 = vsel %vm2401_vm6, %v1175_v34, 0.0  ;;  %v1191_v37 = vadd.f32 %v1189_v38, %v1140_v46  ;;  %v1192_v15 = vadd.f32 %v1190_v35, %v1141_v4  ;;  %v1273_v21 = vperm.slane %v1269_v47, 3 }
 0x263   : > { %v1198_v42 = vperm.slane %v1177_v36, 0  ;;  %v1199_v45 = vperm.slane %v1177_v36, 4  ;;  %v1254_v29 = vperm.slane %v1177_v36, 2  ;;  %v1255_v55 = vperm.slane %v1177_v36, 6 }
 0x264   : > { %v1220_v31 = vadd.f32 %v1218_v18, %v1191_v37  ;;  %v1221_v28 = vadd.f32 %v1219_v63, %v1192_v15  ;;  %v1226_v20 = vperm.slane %v1177_v36, 1  ;;  %v1227_v7 = vperm.slane %v1177_v36, 5  ;;  %v2746_v18 = vld [vmem:[#allocation2 + $0x4] sm:$0xff] }
 0x265   : > { %v1202_v14 = vperm.slane %v1198_v42, 0  ;;  %v1203_v27 = vperm.slane %v1199_v45, 0  ;;  %v1195_v57 = vpop.permute.xlu1 %1194  ;;  %v1282_v53 = vperm.slane %v1177_v36, 3  ;;  %v1283_v46 = vperm.slane %v1177_v36, 7 }
 0x266   : > { %v1248_v3 = vadd.f32 %v1246_v25, %v1220_v31  ;;  %v1249_v40 = vadd.f32 %v1247_v23, %v1221_v28  ;;  %v1258_v4 = vperm.slane %v1254_v29, 2  ;;  %v1259_v61 = vperm.slane %v1255_v55, 2 }
 0x267   : > { %v1204_v39 = vmul.f32 %v1202_v14, %v1195_v57  ;;  %v1205_v58 = vmul.f32 %v1203_v27, %v1195_v57  ;;  %v1230_v62 = vperm.slane %v1226_v20, 1  ;;  %v1231_v9 = vperm.slane %v1227_v7, 1 }
 0x268   : > { %v1286_v10 = vperm.slane %v1282_v53, 3  ;;  %v1287_v11 = vperm.slane %v1283_v46, 3  ;;  %v1260_v52 = vmul.f32 %v1258_v4, %v1252_v16  ;;  %v1261_v30 = vmul.f32 %v1259_v61, %v1252_v16  ;;  %v2768_v4 = vld [vmem:[#allocation2 + $0xc] sm:$0xf] }
 0x269   : > { %v1206_v54 = vadd.f32 %v1204_v39, %v1154_v48  ;;  %v1207_v60 = vadd.f32 %v1205_v58, %v1155_v49  ;;  %v1268_v49 = vperm.slane %v2731_v44, 3  ;;  %v1296_v63 = vperm.slane %v2746_v18, 0 }
 0x26a   : > { %v1288_v6 = vmul.f32 %v1286_v10, %v1280_v13  ;;  %v1289_v51 = vmul.f32 %v1287_v11, %v1280_v13  ;;  %v1297_v25 = vperm.slane %v2746_v18, 4  ;;  %v1298_v44 = vperm.slane %v2543_v59, 0 }
 0x26b   : > { %v1272_v8 = vperm.slane %v1268_v49, 3  ;;  %v1302_v38 = vperm.slane %v1296_v63, 0  ;;  %v2183_v59 = vmov 29   ;;  %vm1317_vm6 = vcmask 916480  }
 0x26c   : > { %v1303_v35 = vperm.slane %v1297_v25, 0  ;;  %v1304_v34 = vperm.slane %v1298_v44, 0  ;;  %1958 = vset.pattern.permute.xlu0 %v2183_v59  ;;  %v1353_v61 = vperm.slane %v2768_v4, 1  ;;  %v2185_v10 = vmov 30  }
 0x26e   : > { %v1224_v50 = vpop.permute.xlu1 %1223  ;;  %v1359_v16 = vperm.slane %v1353_v61, 1 }
 0x26f   : > { %v1232_v22 = vmul.f32 %v1230_v62, %v1224_v50  ;;  %v1233_v2 = vmul.f32 %v1231_v9, %v1224_v50 }
 0x271   : > { %v1234_v1 = vadd.f32 %v1232_v22, %v1206_v54  ;;  %v1235_v48 = vadd.f32 %v1233_v2, %v1207_v60  ;;  %v1351_v54 = vperm.slane %v2746_v18, 1  ;;  %v1352_v60 = vperm.slane %v2746_v18, 5 }
 0x273   : > { %v1262_v5 = vadd.f32 %v1260_v52, %v1234_v1  ;;  %v1263_v19 = vadd.f32 %v1261_v30, %v1235_v48  ;;  %v1358_v53 = vperm.slane %v1352_v60, 1 }
 0x275   : > { %v2744_v17 = vadd.f32 %v1289_v51, %v1263_v19  ;;  %v1290_v43 = vadd.f32 %v1288_v6, %v1262_v5 }
 0x277   : > { %v1266_v24 = vpop.permute.xlu1 %1265 }
 0x278   : > { %v1274_v26 = vmul.f32 %v1272_v8, %v1266_v24  ;;  %v1275_v12 = vmul.f32 %v1273_v21, %v1266_v24  ;;  %v1404_v24 = vperm.slane %v2746_v18, 2 }
 0x27a   : > { %v1276_v23 = vadd.f32 %v1274_v26, %v1248_v3  ;;  %v2751_v32 = vadd.f32 %v1275_v12, %v1249_v40  ;;  %v1357_v40 = vperm.slane %v1351_v54, 1  ;;  %v1405_v26 = vperm.slane %v2746_v18, 6 }
 0x27b   : > { %v1410_v25 = vperm.slane %v1404_v24, 2 }
 0x27c   : > { %v1411_v44 = vperm.slane %v1405_v26, 2 }
 0x280   : > { %v1294_v36 = vpop.permute.xlu1 %1293 }
 0x281   : > { %v1305_v37 = vmul.f32 %v1302_v38, %v1294_v36  ;;  %v1306_v15 = vmul.f32 %v1303_v35, %v1294_v36  ;;  %v1307_v42 = vmul.f32 %v1304_v34, %v1294_v36 }
 0x283   : > { %1315 = vrot.lane.b32.xlu1 %v1307_v42, %s2182_s24  ;;  %1313 = vrot.lane.b32.xlu0 %v1306_v15, %s2182_s24 }
 0x284   : > { %1311 = vrot.lane.b32.xlu2 %v1305_v37, %s2182_s24  ;;  %v1457_v37 = vperm.slane %v2746_v18, 3 }
 0x286   : > { %v1463_v15 = vperm.slane %v1457_v37, 3 }
 0x28c   : > { %1325 = vperm.xlu2 %1957, %v2664_v33  }
 0x294   : > { %1959 = vset.pattern.permute.xlu2 %v2183_v59 }
 0x2de   : > { %v1312_v45 = vpop.permute.xlu2 %1311 }
 0x2e6   : > { %v1326_v31 = vpop.permute.xlu2 %1325 }
 0x2e7   : > { %v1328_v28 = vmul.f32 %v1326_v31, %v1302_v38  ;;  %v1329_v14 = vmul.f32 %v1326_v31, %v1303_v35  ;;  %v1330_v27 = vmul.f32 %v1326_v31, %v1304_v34 }
 0x2e9   : > { %1338 = vrot.lane.b32.xlu2 %v1330_v27, %s2184_s8  ;;  %1336 = vrot.lane.b32.xlu1 %v1329_v14, %s2184_s8 }
 0x2ea   : > { %1334 = vrot.lane.b32.xlu0 %v1328_v28, %s2184_s8  ;;  %v1458_v28 = vperm.slane %v2746_v18, 7 }
 0x2f2   : > { %1348 = vperm.xlu0 %1958, %v2672_v41  }
 0x2f5   : > { %v1314_v57 = vpop.permute.xlu0 %1313  ;;  %v1316_v29 = vpop.permute.xlu1 %1315 }
 0x2f6   : > { %v1318_v39 = vsel %vm1317_vm6, %v1312_v45, %v1314_v57  ;;  %v1319_v47 = vsel %vm1317_vm6, %v1314_v57, %v1316_v29  ;;  %v2188_v29 = vmov 33  }
 0x2f7   : > { %v1322_v58 = vadd.f32 %v1318_v39, %v1276_v23  ;;  %v1323_v6 = vadd.f32 %v1319_v47, %v2751_v32  ;;  %v1406_v32 = vperm.slane %v2768_v4, 2  ;;  %v2187_v39 = vmov 32  }
 0x2f9   : > { %v1412_v34 = vperm.slane %v1406_v32, 2 }
 0x2fa   : > { %1960 = vset.pattern.permute.xlu0 %v2185_v10 }
 0x343   : > { %v2775_v11 = vpop.permute.xlu2 %1338 }
 0x35b   : > { %v2762_v55 = vpop.permute.xlu1 %1336 }
 0x35c   : > { %v1335_v20 = vpop.permute.xlu0 %1334 }
 0x35d   : > { %v1341_v7 = vsel %vm1340_vm11, %v1335_v20, %v2762_v55 }
 0x35e   : > { %v1345_v3 = vadd.f32 %v1341_v7, %v1290_v43  ;;  %v2186_v43 = vmov 31   ;;  %v1459_v7 = vperm.slane %v2768_v4, 3 }
 0x35f   : > { %1963 = vset.pattern.permute.xlu1 %v2186_v43 }
 0x360   : > { %v1465_v60 = vperm.slane %v1459_v7, 3 }
 0x364   : > { %v1349_v46 = vpop.permute.xlu0 %1348 }
 0x365   : > { %v1360_v62 = vmul.f32 %v1357_v40, %v1349_v46  ;;  %v1361_v9 = vmul.f32 %v1358_v53, %v1349_v46  ;;  %v1362_v50 = vmul.f32 %v1359_v16, %v1349_v46 }
 0x367   : > { %1368 = vrot.lane.b32.xlu2 %v1361_v9, %s2182_s24  ;;  %1366 = vrot.lane.b32.xlu1 %v1360_v62, %s2182_s24 }
 0x36f   : > { %1379 = vperm.xlu2 %1959, %v2664_v33   ;;  %1370 = vrot.lane.b32.xlu1 %v1362_v50, %s2182_s24 }
 0x377   : > { %1961 = vset.pattern.permute.xlu2 %v2185_v10 }
 0x3c1   : > { %v1369_v22 = vpop.permute.xlu2 %1368 }
 0x3c9   : > { %v1380_v2 = vpop.permute.xlu2 %1379 }
 0x3ca   : > { %v1382_v13 = vmul.f32 %v1380_v2, %v1357_v40  ;;  %v1383_v52 = vmul.f32 %v1380_v2, %v1358_v53  ;;  %v1384_v30 = vmul.f32 %v1380_v2, %v1359_v16  ;;  %v2191_v2 = vmov 34  }
 0x3cc   : > { %1392 = vrot.lane.b32.xlu2 %v1384_v30, %s2184_s8  ;;  %1388 = vrot.lane.b32.xlu0 %v1382_v13, %s2184_s8 }
 0x3cd   : > { %1390 = vrot.lane.b32.xlu1 %v1383_v52, %s2184_s8 }
 0x3d4   : > { %1401 = vperm.xlu0 %1960, %v2672_v41  }
 0x3d9   : > { %v1367_v1 = vpop.permute.xlu1 %1366 }
 0x3da   : > { %v1372_v48 = vsel %vm1317_vm6, %v1367_v1, %v1369_v22 }
 0x3db   : > { %v1376_v49 = vadd.f32 %v1372_v48, %v1322_v58  ;;  %v1464_v58 = vperm.slane %v1458_v28, 3 }
 0x3dc   : > { %1962 = vset.pattern.permute.xlu0 %v2186_v43 }
 0x3dd   : > { %1454 = vperm.xlu0 %1962, %v2672_v41  }
 0x3e1   : > { %v1371_v51 = vpop.permute.xlu1 %1370 }
 0x3e2   : > { %v1373_v5 = vsel %vm1317_vm6, %v1369_v22, %v1371_v51 }
 0x3e3   : > { %v1377_v19 = vadd.f32 %v1373_v5, %v1323_v6 }
 0x3e5   : > { %1966 = vset.pattern.permute.xlu0 %v2188_v29 }
 0x426   : > { %v2802_v45 = vpop.permute.xlu2 %1392 }
 0x43e   : > { %v1389_v8 = vpop.permute.xlu0 %1388 }
 0x43f   : > { %v2786_v21 = vpop.permute.xlu1 %1390 }
 0x440   : > { %v1394_v12 = vsel %vm1340_vm11, %v1389_v8, %v2786_v21 }
 0x441   : > { %v2792_v63 = vadd.f32 %v1394_v12, %v1345_v3 }
 0x446   : > { %v1402_v23 = vpop.permute.xlu0 %1401 }
 0x447   : > { %v1413_v38 = vmul.f32 %v1410_v25, %v1402_v23  ;;  %v1414_v35 = vmul.f32 %v1411_v44, %v1402_v23  ;;  %v1415_v36 = vmul.f32 %v1412_v34, %v1402_v23 }
 0x449   : > { %1421 = vrot.lane.b32.xlu2 %v1414_v35, %s2182_s24  ;;  %1419 = vrot.lane.b32.xlu1 %v1413_v38, %s2182_s24  ;;  %v1395_v38 = vsel %vm1340_vm11, %v2786_v21, %v2802_v45 }
 0x44f   : > { %v1455_v42 = vpop.permute.xlu0 %1454 }
 0x450   : > { %v1466_v59 = vmul.f32 %v1463_v15, %v1455_v42  ;;  %v1467_v54 = vmul.f32 %v1464_v58, %v1455_v42  ;;  %v1468_v3 = vmul.f32 %v1465_v60, %v1455_v42 }
 0x451   : > { %1432 = vperm.xlu2 %1961, %v2664_v33   ;;  %1423 = vrot.lane.b32.xlu1 %v1415_v36, %s2182_s24 }
 0x452   : > { %1472 = vrot.lane.b32.xlu0 %v1466_v59, %s2182_s24 }
 0x459   : > { %1485 = vperm.xlu1 %1963, %v2664_v33   ;;  %1965 = vset.pattern.permute.xlu2 %v2187_v39 }
 0x461   : > { %1964 = vset.pattern.permute.xlu1 %v2187_v39 }
 0x4a3   : > { %v1422_v31 = vpop.permute.xlu2 %1421 }
 0x4ab   : > { %v1433_v14 = vpop.permute.xlu2 %1432 }
 0x4ac   : > { %v1435_v27 = vmul.f32 %v1433_v14, %v1410_v25  ;;  %v1436_v57 = vmul.f32 %v1433_v14, %v1411_v44  ;;  %v1437_v20 = vmul.f32 %v1433_v14, %v1412_v34  ;;  %v1342_v44 = vsel %vm1340_vm11, %v2762_v55, %v2775_v11 }
 0x4ad   : > { %v1346_v36 = vadd.f32 %v1342_v44, %v2744_v17 }
 0x4ae   : > { %1441 = vrot.lane.b32.xlu2 %v1435_v27, %s2184_s8  ;;  %1443 = vrot.lane.b32.xlu1 %v1436_v57, %s2184_s8 }
 0x4af   : > { %v1399_v21 = vadd.f32 %v1395_v38, %v1346_v36 }
 0x4b6   : > { %1445 = vrot.lane.b32.xlu2 %v1437_v20, %s2184_s8  ;;  %1474 = vrot.lane.b32.xlu1 %v1467_v54, %s2182_s24 }
 0x4bb   : > { %v1420_v40 = vpop.permute.xlu1 %1419 }
 0x4bc   : > { %v1425_v53 = vsel %vm1317_vm6, %v1420_v40, %v1422_v31 }
 0x4bd   : > { %v2811_v46 = vadd.f32 %v1425_v53, %v1376_v49 }
 0x4be   : > { %1476 = vrot.lane.b32.xlu2 %v1468_v3, %s2182_s24  ;;  %1506 = vrot.lane.b32.xlu1 %v2746_v18, %s2189_s9 }
 0x4c3   : > { %v1424_v61 = vpop.permute.xlu1 %1423 }
 0x4c4   : > { %v1426_v62 = vsel %vm1317_vm6, %v1422_v31, %v1424_v61  ;;  %v1473_v47 = vpop.permute.xlu0 %1472 }
 0x4c5   : > { %v2816_v9 = vadd.f32 %v1426_v62, %v1377_v19 }
 0x4c6   : > { %1508 = vrot.lane.b32.xlu2 %v2768_v4, %s2189_s9  ;;  %1519 = vrot.lane.b32.xlu1 %v2768_v4, %s2190_s10  ;;  %v2192_v4 = vmov 35  }
 0x4cb   : > { %v1486_v16 = vpop.permute.xlu1 %1485 }
 0x4cc   : > { %v1488_v50 = vmul.f32 %v1486_v16, %v1463_v15  ;;  %v1489_v10 = vmul.f32 %v1486_v16, %v1464_v58  ;;  %v1490_v22 = vmul.f32 %v1486_v16, %v1465_v60 }
 0x4ce   : > { %1529 = vperm.xlu1 %1964, %v2672_v41   ;;  %1496 = vrot.lane.b32.xlu2 %v1489_v10, %s2184_s8 }
 0x4cf   : > { %1494 = vrot.lane.b32.xlu0 %v1488_v50, %s2184_s8 }
 0x4d6   : > { %1967 = vset.pattern.permute.xlu1 %v2188_v29  ;;  %1544 = vperm.xlu2 %1965, %v2664_v33  }
 0x4d7   : > { %1517 = vrot.lane.b32.xlu0 %v2746_v18, %s2190_s10  ;;  %1573 = vperm.xlu1 %1967, %v2664_v33  }
 0x4de   : > { %1968 = vset.pattern.permute.xlu2 %v2191_v2 }
 0x4df   : > { %1498 = vrot.lane.b32.xlu0 %v1490_v22, %s2184_s8  ;;  %1969 = vset.pattern.permute.xlu1 %v2191_v2 }
 0x4e0   : > { %1601 = vperm.xlu1 %1969, %v2664_v33   ;;  %1587 = vperm.xlu2 %1968, %v2672_v41  }
 0x4e7   : > { %1559 = vperm.xlu0 %1966, %v2672_v41  }
 0x4e8   : > { %1970 = vset.pattern.permute.xlu2 %v2192_v4 }
 0x4e9   : > { %1615 = vperm.xlu2 %1970, %v2672_v41  }
 0x4ef   : > { %1971 = vset.pattern.permute.xlu0 %v2192_v4 }
 0x4f0   : > { %1629 = vperm.xlu0 %1971, %v2664_v33  }
 0x508   : > { %v1442_v18 = vpop.permute.xlu2 %1441 }
 0x510   : > { %v1446_v52 = vpop.permute.xlu2 %1445 }
 0x518   : > { %v1477_v1 = vpop.permute.xlu2 %1476 }
 0x520   : > { %v1444_v13 = vpop.permute.xlu1 %1443  ;;  %v1509_v49 = vpop.permute.xlu2 %1508 }
 0x521   : > { %v1511_v6 = vrot.slane %v1509_v49, 4  ;;  %v1447_v55 = vsel %vm1340_vm11, %v1442_v18, %v1444_v13  ;;  %v1448_v11 = vsel %vm1340_vm11, %v1444_v13, %v1446_v52 }
 0x522   : > { %v1451_v56 = vadd.f32 %v1447_v55, %v2792_v63  ;;  %v1452_v14 = vadd.f32 %v1448_v11, %v1399_v21 }
 0x528   : > { %v1475_v30 = vpop.permute.xlu1 %1474  ;;  %v1497_v43 = vpop.permute.xlu2 %1496 }
 0x529   : > { %v1478_v59 = vsel %vm1317_vm6, %v1473_v47, %v1475_v30  ;;  %v1479_v45 = vsel %vm1317_vm6, %v1475_v30, %v1477_v1 }
 0x52a   : > { %v1482_v39 = vadd.f32 %v1478_v59, %v2811_v46  ;;  %v1483_v58 = vadd.f32 %v1479_v45, %v2816_v9 }
 0x530   : > { %v1507_v48 = vpop.permute.xlu1 %1506  ;;  %v1545_v26 = vpop.permute.xlu2 %1544 }
 0x531   : > { %v1510_v51 = vrot.slane %v1507_v48, 4 }
 0x533   : > { %v1512_v8 = vsel %vm307_vm4, %v1510_v51, %v1511_v6 }
 0x534   : > { %v1514_v41 = vsel %vm1513_vm12, %v1507_v48, %v1512_v8 }
 0x535   : > { %v2835_v33 = vsel %vm2561_vm14, %v1514_v41, 0.0 }
 0x536   : > { %v1533_v35 = vperm.slane %v2835_v33, 0  ;;  %v1534_v0 = vperm.slane %v2835_v33, 4  ;;  %v1562_v7 = vperm.slane %v2835_v33, 1  ;;  %v1590_v60 = vperm.slane %v2835_v33, 2 }
 0x537   : > { %v1563_v63 = vperm.slane %v2835_v33, 5  ;;  %v1591_v53 = vperm.slane %v2835_v33, 6  ;;  %v1618_v9 = vperm.slane %v2835_v33, 3  ;;  %v1619_v22 = vperm.slane %v2835_v33, 7 }
 0x538   : > { %v1520_v5 = vpop.permute.xlu1 %1519  ;;  %v1537_v31 = vperm.slane %v1533_v35, 0  ;;  %v1538_v28 = vperm.slane %v1534_v0, 0  ;;  %v1566_v18 = vperm.slane %v1562_v7, 1  ;;  %v1594_v48 = vperm.slane %v1590_v60, 2 }
 0x539   : > { %v1522_v12 = vrot.slane %v1520_v5, 4  ;;  %v1567_v1 = vperm.slane %v1563_v63, 1  ;;  %v1595_v49 = vperm.slane %v1591_v53, 2  ;;  %v1622_v41 = vperm.slane %v1618_v9, 3 }
 0x53a   : > { %v1588_v54 = vpop.permute.xlu2 %1587 }
 0x53b   : > { %v1597_v38 = vmul.f32 %v1595_v49, %v1588_v54 }
 0x540   : > { %v1530_v23 = vpop.permute.xlu1 %1529 }
 0x541   : > { %v1495_v19 = vpop.permute.xlu0 %1494  ;;  %v1539_v61 = vmul.f32 %v1537_v31, %v1530_v23  ;;  %v1540_v62 = vmul.f32 %v1538_v28, %v1530_v23 }
 0x542   : > { %v1500_v46 = vsel %vm1340_vm11, %v1495_v19, %v1497_v43 }
 0x543   : > { %v1504_v13 = vadd.f32 %v1500_v46, %v1451_v56  ;;  %v1541_v47 = vadd.f32 %v1539_v61, %v1482_v39  ;;  %v1542_v6 = vadd.f32 %v1540_v62, %v1483_v58  ;;  %v1616_v36 = vpop.permute.xlu2 %1615 }
 0x544   : > { %v1624_v45 = vmul.f32 %v1622_v41, %v1616_v36 }
 0x549   : > { %v1518_v24 = vpop.permute.xlu0 %1517  ;;  %v1574_v29 = vpop.permute.xlu1 %1573 }
 0x54a   : > { %v1521_v25 = vrot.slane %v1518_v24, 4 }
 0x54c   : > { %v1523_v32 = vsel %vm307_vm4, %v1521_v25, %v1522_v12 }
 0x54d   : > { %v1525_v34 = vsel %vm1524_vm13, %v1518_v24, %v1523_v32  ;;  %v1623_v24 = vperm.slane %v1619_v22, 3  ;;  %v1596_v32 = vmul.f32 %v1594_v48, %v1588_v54 }
 0x54e   : > { %v2849_v37 = vsel %vm2602_vm2, %v1525_v34, 0.0 }
 0x54f   : > { %v1548_v15 = vperm.slane %v2849_v37, 0  ;;  %v1549_v42 = vperm.slane %v2849_v37, 4  ;;  %v1576_v3 = vperm.slane %v2849_v37, 1  ;;  %v1577_v40 = vperm.slane %v2849_v37, 5 }
 0x550   : > { %v1604_v2 = vperm.slane %v2849_v37, 2  ;;  %v1605_v4 = vperm.slane %v2849_v37, 6  ;;  %v1632_v0 = vperm.slane %v2849_v37, 3  ;;  %v1633_v34 = vperm.slane %v2849_v37, 7 }
 0x551   : > { %v1499_v17 = vpop.permute.xlu0 %1498  ;;  %v1552_v27 = vperm.slane %v1548_v15, 0  ;;  %v1553_v57 = vperm.slane %v1549_v42, 0  ;;  %v1580_v52 = vperm.slane %v1576_v3, 1  ;;  %v1581_v30 = vperm.slane %v1577_v40, 1 }
 0x552   : > { %v1501_v20 = vsel %vm1340_vm11, %v1497_v43, %v1499_v17  ;;  %v1608_v33 = vperm.slane %v1604_v2, 2  ;;  %v1602_v35 = vpop.permute.xlu1 %1601  ;;  %v1625_v31 = vmul.f32 %v1623_v24, %v1616_v36  ;;  %v1636_v28 = vperm.slane %v1632_v0, 3 }
 0x553   : > { %v1554_v16 = vmul.f32 %v1552_v27, %v1545_v26  ;;  %v1505_v50 = vadd.f32 %v1501_v20, %v1452_v14  ;;  %v1555_v10 = vmul.f32 %v1553_v57, %v1545_v26  ;;  %v1609_v26 = vperm.slane %v1605_v4, 2 }
 0x554   : > { %v1582_v12 = vmul.f32 %v1580_v52, %v1574_v29  ;;  %v1583_v25 = vmul.f32 %v1581_v30, %v1574_v29  ;;  %v1610_v21 = vmul.f32 %v1608_v33, %v1602_v35  ;;  %v1637_v17 = vperm.slane %v1633_v34, 3 }
 0x555   : > { %v1556_v5 = vadd.f32 %v1554_v16, %v1504_v13  ;;  %v1557_v19 = vadd.f32 %v1555_v10, %v1505_v50  ;;  %v1611_v59 = vmul.f32 %v1609_v26, %v1602_v35 }
 0x557   : > { %v1584_v55 = vadd.f32 %v1582_v12, %v1556_v5  ;;  %v1585_v11 = vadd.f32 %v1583_v25, %v1557_v19 }
 0x559   : > { %v1560_v51 = vpop.permute.xlu0 %1559  ;;  %v1612_v56 = vadd.f32 %v1610_v21, %v1584_v55  ;;  %v1613_v14 = vadd.f32 %v1611_v59, %v1585_v11 }
 0x55a   : > { %v1568_v43 = vmul.f32 %v1566_v18, %v1560_v51  ;;  %v1569_v8 = vmul.f32 %v1567_v1, %v1560_v51 }
 0x55c   : > { %v1570_v44 = vadd.f32 %v1568_v43, %v1541_v47  ;;  %v1571_v23 = vadd.f32 %v1569_v8, %v1542_v6 }
 0x55e   : > { %v1598_v15 = vadd.f32 %v1596_v32, %v1570_v44  ;;  %v1599_v42 = vadd.f32 %v1597_v38, %v1571_v23 }
 0x560   : > { %v1626_v57 = vadd.f32 %v1624_v45, %v1598_v15  ;;  %v1627_v39 = vadd.f32 %v1625_v31, %v1599_v42 }
 0x562   : > { %v1630_v27 = vpop.permute.xlu0 %1629  ;;  %v1642_v7 = vmax.f32 %v1626_v57, 0.0  ;;  %v1643_v54 = vmax.f32 %v1627_v39, 0.0 }
 0x563   : > { %v1638_v58 = vmul.f32 %v1636_v28, %v1630_v27  ;;  %v1639_v37 = vmul.f32 %v1637_v17, %v1630_v27 }
 0x565   : > { %v1640_v29 = vadd.f32 %v1638_v58, %v1612_v56  ;;  %v1641_v20 = vadd.f32 %v1639_v37, %v1613_v14 }
 0x567   : > { %v1644_v60 = vmax.f32 %v1640_v29, 0.0  ;;  %v1645_v3 = vmax.f32 %v1641_v20, 0.0 }
 0x569   : > { %v1646_v40 = vsub.f32 %v1642_v7, %v1644_v60  ;;  %v1647_v63 = vsub.f32 %v1643_v54, %v1645_v3 }
 0x56b   : > { %v1650_v53 = vrot.slane %v1647_v63, 4 }
 0x56d   : > { %v1651_v46 = vsel %vm307_vm4, %v1646_v40, %v1650_v53 }
 0x56e   : > { %1653 = vst [vmem:[%s271_s27] sm:$0xff] %v1651_v46 }
 0x56f   : > { %2093 = shalt.err (!%p2090_p11)
}
 0x570   : > { %1790 = dma.vmem_to_hbm [thread:$0]  (%p2289_p3), %s1669_s28, 128, %s1671_s6, %s1655_s22  }
 0x571 PF: > { %s1682_s17 = sand.u32 1, %s2124_s18   ;;  %p2929_p12 = scmp.ge.s32.totalorder %s2136_s21, 2 }
 0x572   : > { %s1683_s10 = scalar_lea.sflag [#allocation5], %s1682_s17 }
 0x573   : > { %p1804_p13 = pnand %p2929_p12, %p2258_p6 }
 0x575   : > { %p1805_p0 = pneg %p1804_p13 }
 0x577   : > { %2119 = dma.done.wait (%p1805_p0), %s1683_s10, 128  }
 0x578   : > { %2121 = vsyncadd (%p1805_p0), %s1683_s10, 4294967168  ;;  %p19_p5 = scmp.ge.s32.totalorder %s2279_s12, 4   ;;  %s2930_s18 = smov %s2128_s19 }
 0x579   : > { %s2931_s19 = smov %s2132_s20  ;;  %s2932_s20 = smov %s2295_s16 }
 0x57a   : > { %s2933_s21 = smov %s2279_s12  ;;  %21 = sbr.rel (!%p19_p5) target bundleno = 6 (0x6), region = 93 }
 0x57f   :  { %1689 = vsyncpa [#allocation4], 1 }
 0x580   :  { %1691 = vsyncpa [#allocation4 + $0x1], 1 }
 0x581   :  { %1692 = vsyncpa [#allocation7], 1 }
 0x582   :  { %1693 = vsyncpa [#allocation5], 1 }
 0x583   :  { %1695 = vsyncpa [#allocation5 + $0x1], 1 }

</bundles_post_ra>
